<compile_context>
chip_gen: v5e
topology: v5e:2x2
jax: 0.10.0
libtpu: 0.0.40
codegen_flags: <defaults>
</compile_context>

<pallas_src>
import numpy as np
import jax
import jax.numpy as jnp
from jax.experimental import pallas as pl
from jax.experimental.pallas import tpu as pltpu

# ---- config (mirrors Map.__init__: config.shape = "2 4 8 8") ----------------
B, C, H, W = 2, 4, 8, 8          # C == rank - num_slc
CLAS = 3                         # config.clas
HW = H * W
CHW = C * HW
SPECTRAL_MAP = True              # config.spectral_map
EPS = 1e-5                       # BatchNorm eps
SLOPE = 0.01                     # LeakyReLU negative slope (PyTorch default)
CPAD = 8                         # sublane-friendly padding for tiny matmul dims

assert C <= 4, "dense Conv1d folding assumes k=7/pad=3 reaches the whole length-C axis"
assert C & (C - 1) == 0, "roll-based block fold assumes power-of-two C"
assert CLAS - 1 <= CPAD and C <= CPAD

# packed VMEM row-vector layout (every row is CHW lanes wide)
_V_SPEB, _V_SPEG, _V_SPEBE, _V_TB, _V_OUTG, _V_OUTBE = range(6)
# packed SMEM scalar layout
_S_MAPB, _S_MAPG, _S_MAPBE = 0, 1, 2          # ly_map conv bias, BN2d(1) gamma/beta
_S_LINB = 3                                   # Linear bias (CLAS-1 entries)
_N_SCAL = _S_LINB + (CLAS - 1)

_VMEM = pl.BlockSpec(memory_space=pltpu.MemorySpace.VMEM)
_SMEM = pl.BlockSpec(memory_space=pltpu.MemorySpace.SMEM)


def _leaky(x):
    return jnp.where(x > 0, x, SLOPE * x)


def _fold_tile_blocks(v):
    """Sum the C lane-blocks (each HW lanes wide) of v and tile the sum back to
    every block, using log2(C) full-width lane rotations (XLU). No sub-128 slices."""
    s = CHW // 2
    while s >= HW:
        v = v + pltpu.roll(v, s, axis=1)
        s //= 2
    return v


# ---------------------------------------------------------------------------
# Fused kernel: ly_spe -> ly_map -> ful_clas -> mask bands + convs -> BN + LReLU
# ---------------------------------------------------------------------------
def _map_fused_kernel(x_ref, wspe_ref, wmap_ref, wmask_ref, wlin_ref,
                      gfold_ref, hbcast_ref, vec_ref, scal_ref, o_ref):
    f32 = jnp.float32
    bf16 = jnp.bfloat16
    x = x_ref[...]                                                    # (B, CHW) f32

    # ---- ly_spe: Conv1d(HW->HW, k=7, pad=3) + BatchNorm1d(HW) + LeakyReLU ----
    if SPECTRAL_MAP:
        pre = jnp.dot(x.astype(bf16), wspe_ref[...],
                      preferred_element_type=f32)                     # one K=CHW MXU dot
        pre = pre + vec_ref[_V_SPEB:_V_SPEB + 1, :]                   # bias tiled to CHW
        # single-pass BN1d batch stats, fully lane-dense: batch sums of (x, x^2),
        # then fold-over-C-blocks + tile-back via lane rolls.
        st = jnp.concatenate(
            [jnp.sum(pre, axis=0, keepdims=True),
             jnp.sum(pre * pre, axis=0, keepdims=True)], axis=0)      # (2, CHW)
        st = _fold_tile_blocks(st)
        inv_bc = 1.0 / float(B * C)
        m = st[0:1, :] * inv_bc                                       # per-HW mean, tiled
        m2 = st[1:2, :] * inv_bc
        scale = vec_ref[_V_SPEG:_V_SPEG + 1, :] * jax.lax.rsqrt(m2 - m * m + EPS)
        shift = vec_ref[_V_SPEBE:_V_SPEBE + 1, :] - m * scale
        acts = _leaky(pre * scale + shift)                            # (B, CHW) full width
    else:
        acts = x

    # ---- ly_map: Conv2d(C->1, 3x3, pad=1) + BatchNorm2d(1) + Sigmoid ---------
    mp = jnp.dot(acts.astype(bf16), wmap_ref[...],
                 preferred_element_type=f32) + scal_ref[_S_MAPB]      # (B, HW), one K=CHW dot
    inv_bhw = 1.0 / float(B * HW)
    mm = jnp.sum(mp) * inv_bhw
    vv = jnp.sum(mp * mp) * inv_bhw - mm * mm
    ymap = scal_ref[_S_MAPG] * (mp - mm) * jax.lax.rsqrt(vv + EPS) + scal_ref[_S_MAPBE]
    map_sig = jax.nn.sigmoid(ymap)                                    # (B, HW)

    # ---- ful_clas: Linear(HW -> CLAS-1) + Sigmoid, mean over batch -----------
    lg = jnp.dot(map_sig, wlin_ref[...], preferred_element_type=f32)  # (B, CPAD) tiny MXU dot
    inv_b = 1.0 / float(B)
    thrs = [jnp.sum(jax.nn.sigmoid(lg[:, j:j + 1] + scal_ref[_S_LINB + j])) * inv_b
            for j in range(CLAS - 1)]                                 # CLAS-1 scalars num_c[j]

    # ---- mask bands + CLAS x Conv2d(C->C, 3x3, pad=1), fused into ONE matmul --
    # The class selections a_i are mutually exclusive bands of map_sig, and
    # b_i = a_i * map is identical across the conv's C input channels, so class
    # weights were pre-summed over c_in, folded dense and stacked along K.
    sels = []
    rem = jnp.ones_like(map_sig)                                      # "not yet selected"
    for i in range(CLAS):
        thr = thrs[i] if i < CLAS - 1 else 1e-7
        gi = (map_sig > thr).astype(f32)
        sels.append(rem * gi * map_sig)                               # b_i = a_i * map
        if i < CLAS - 1:
            rem = rem * (1.0 - gi)
    bsel = jnp.concatenate(sels, axis=1)                              # (B, CLAS*HW)
    ou = (jnp.dot(bsel.astype(bf16), wmask_ref[...], preferred_element_type=f32)
          + vec_ref[_V_TB:_V_TB + 1, :])                              # (B, CHW) one K=192 dot

    # ---- B: BatchNorm2d(C) + LeakyReLU, single unmasked full-width store -----
    sums = jnp.concatenate(
        [jnp.sum(ou, axis=0, keepdims=True),
         jnp.sum(ou * ou, axis=0, keepdims=True)], axis=0)            # (2, CHW)
    stats = jnp.dot(sums, gfold_ref[...], preferred_element_type=f32) * inv_bhw  # (2, CPAD)
    m_c = stats[0:1, :]
    v_c = stats[1:2, :] - m_c * m_c
    mv_full = jnp.dot(jnp.concatenate([m_c, v_c], axis=0), hbcast_ref[...],
                      preferred_element_type=f32)                     # (2, CHW) broadcast back
    inv_std = jax.lax.rsqrt(mv_full[1:2, :] + EPS)
    y = (ou - mv_full[0:1, :]) * (vec_ref[_V_OUTG:_V_OUTG + 1, :] * inv_std) \
        + vec_ref[_V_OUTBE:_V_OUTBE + 1, :]
    o_ref[...] = _leaky(y)                                            # one (B, CHW) store


# ---------------------------------------------------------------------------
# Init-time folding of the convolutions into dense matrices
# ---------------------------------------------------------------------------
def _conv3x3_to_dense(w):
    """w: (Cout, Cin, 3, 3) torch weight -> dense (Cin*HW, Cout*HW) for pad=1 conv."""
    cout, cin = w.shape[0], w.shape[1]
    d = np.zeros((cin * HW, cout * HW), np.float32)
    for co in range(cout):
        for ci in range(cin):
            for h in range(H):
                for ww in range(W):
                    for kh in range(3):
                        for kw in range(3):
                            hp, wp = h + kh - 1, ww + kw - 1
                            if 0 <= hp < H and 0 <= wp < W:
                                d[ci * HW + hp * W + wp, co * HW + h * W + ww] = w[co, ci, kh, kw]
    return d


def _conv1d_to_dense(w):
    """w: (HW_out, HW_in, 7) torch Conv1d weight -> dense (C*HW, C*HW).

    With k=7, pad=3 every input position p reaches every output position l of the
    length-C (C<=4) axis through exactly one tap k = p - l + 3.
    """
    d = np.zeros((CHW, CHW), np.float32)
    for l in range(C):
        for p in range(C):
            k = p - l + 3
            d[p * HW:(p + 1) * HW, l * HW:(l + 1) * HW] = w[:, :, k].T
    return d


def init_params(key):
    ks = jax.random.split(key, 16)
    p = {}

    # ly_spe: Conv1d(HW, HW, k=7, pad=3) + BatchNorm1d(HW)
    w_spe = np.asarray(0.05 * jax.random.normal(ks[0], (HW, HW, 7), jnp.float32))
    p["spe_W"] = jnp.asarray(_conv1d_to_dense(w_spe), dtype=jnp.bfloat16)      # (CHW, CHW)
    spe_b = np.asarray(0.05 * jax.random.normal(ks[1], (HW,), jnp.float32))
    spe_g = np.asarray(1.0 + 0.1 * jax.random.normal(ks[2], (HW,), jnp.float32))
    spe_be = np.asarray(0.1 * jax.random.normal(ks[3], (HW,), jnp.float32))

    # ly_map: Conv2d(C, 1, 3, pad=1) folded dense -> single (CHW, HW) matrix
    w_map = np.asarray(0.1 * jax.random.normal(ks[4], (1, C, 3, 3), jnp.float32))
    p["map_W"] = jnp.asarray(_conv3x3_to_dense(w_map), dtype=jnp.bfloat16)     # (CHW, HW)
    b_map = np.asarray(0.1 * jax.random.normal(ks[5], (1,), jnp.float32))
    g_map = np.asarray(1.0 + 0.1 * jax.random.normal(ks[6], (1,), jnp.float32))
    be_map = np.asarray(0.1 * jax.random.normal(ks[7], (1,), jnp.float32))

    # ful_clas: Linear(HW -> CLAS-1), transposed + lane-padded to CPAD columns
    lin_w = np.asarray(0.1 * jax.random.normal(ks[8], (CLAS - 1, HW), jnp.float32))
    lin_pad = np.zeros((HW, CPAD), np.float32)
    lin_pad[:, :CLAS - 1] = lin_w.T
    p["lin_W"] = jnp.asarray(lin_pad)                                          # (HW, CPAD)
    lin_b = np.asarray(0.1 * jax.random.normal(ks[9], (CLAS - 1,), jnp.float32))

    # maplayer[i]: CLAS x Conv2d(C, C, 3, pad=1); input is channel-uniform ->
    # pre-sum weights over c_in, fold each class dense, stack along K.
    w_cls = np.asarray(0.1 * jax.random.normal(ks[10], (CLAS, C, C, 3, 3), jnp.float32))
    wsum = w_cls.sum(axis=2, keepdims=True)                                    # (CLAS, C, 1, 3, 3)
    p["mask_W"] = jnp.asarray(
        np.concatenate([_conv3x3_to_dense(wsum[i]) for i in range(CLAS)], axis=0),
        dtype=jnp.bfloat16)                                                    # (CLAS*HW, CHW)
    b_cls = np.asarray(0.1 * jax.random.normal(ks[11], (CLAS, C), jnp.float32))

    # final B: BatchNorm2d(C)
    out_g = np.asarray(1.0 + 0.1 * jax.random.normal(ks[12], (C,), jnp.float32))
    out_be = np.asarray(0.1 * jax.random.normal(ks[13], (C,), jnp.float32))

    # per-channel fold / broadcast constants for the final BN (exact, f32, 16 KB)
    gfold = np.zeros((CHW, CPAD), np.float32)
    hbc = np.zeros((CPAD, CHW), np.float32)
    for c in range(C):
        gfold[c * HW:(c + 1) * HW, c] = 1.0
        hbc[c, c * HW:(c + 1) * HW] = 1.0
    p["gfold"] = jnp.asarray(gfold)
    p["hbcast"] = jnp.asarray(hbc)

    # packed full-width (CHW-lane) row vectors
    vecs = np.stack([
        np.tile(spe_b, C), np.tile(spe_g, C), np.tile(spe_be, C),   # ly_spe bias/BN, tiled
        np.repeat(b_cls.sum(axis=0), HW),                           # summed maplayer biases
        np.repeat(out_g, HW), np.repeat(out_be, HW),                # final BN gamma/beta
    ], axis=0).astype(np.float32)
    p["vecs"] = jnp.asarray(vecs)                                   # (6, CHW)

    # packed SMEM scalars: ly_map conv bias, ly_map BN gamma/beta, Linear bias
    scal = np.concatenate([b_map, g_map, be_map, lin_b]).astype(np.float32)
    assert scal.shape == (_N_SCAL,)
    p["scal"] = jnp.asarray(scal)
    return p


# ---------------------------------------------------------------------------
# Forward
# ---------------------------------------------------------------------------
@jax.jit
def map_forward(hr_rhsi, params):
    """hr_rhsi: (B, C, H, W) float32 (NCHW) -> (B, C, H, W)."""
    x2 = hr_rhsi.reshape(B, CHW)        # free NCHW flatten: column = c*HW + h*W + w
    out = pl.pallas_call(
        _map_fused_kernel,
        out_shape=jax.ShapeDtypeStruct((B, CHW), jnp.float32),
        in_specs=[_VMEM,                     # x
                  _VMEM, _VMEM, _VMEM,       # spe_W, map_W, mask_W (bf16)
                  _VMEM,                     # lin_W
                  _VMEM, _VMEM,              # gfold, hbcast (tiny f32)
                  _VMEM,                     # packed row vectors
                  _SMEM],                    # packed scalars
        out_specs=_VMEM,
    )(x2, params["spe_W"], params["map_W"], params["mask_W"], params["lin_W"],
      params["gfold"], params["hbcast"], params["vecs"], params["scal"])
    return out.reshape(B, C, H, W)           # free reshape back to NCHW


if __name__ == "__main__":
    key = jax.random.PRNGKey(0)
    pkey, xkey = jax.random.split(key)
    params = init_params(pkey)
    hr_rhsi = jax.random.normal(xkey, (B, C, H, W), jnp.float32)

    out = jax.block_until_ready(map_forward(hr_rhsi, params))

    assert out.shape == (B, C, H, W), out.shape
    assert out.dtype == jnp.float32
    assert bool(jnp.all(jnp.isfinite(out)))
    print("KERNEL_OK")
</pallas_src>

<mosaic_0001>
module attributes {stable_mosaic.version = 11 : i64} {
  func.func @_map_fused_kernel(%arg0: memref<2x256xf32, #tpu.memory_space<vmem>>, %arg1: memref<256x256xbf16, #tpu.memory_space<vmem>>, %arg2: memref<256x64xbf16, #tpu.memory_space<vmem>>, %arg3: memref<192x256xbf16, #tpu.memory_space<vmem>>, %arg4: memref<64x8xf32, #tpu.memory_space<vmem>>, %arg5: memref<256x8xf32, #tpu.memory_space<vmem>>, %arg6: memref<8x256xf32, #tpu.memory_space<vmem>>, %arg7: memref<6x256xf32, #tpu.memory_space<vmem>>, %arg8: memref<5xf32, #tpu.memory_space<smem>>, %arg9: memref<2x256xf32, #tpu.memory_space<vmem>>) attributes {dimension_semantics = [], scalar_prefetch = 0 : i64, scratch_operands = 0 : i64, tpu.core_type = #tpu.core_type<tc>} {
    %c0 = arith.constant 0 : index
    %c0_0 = arith.constant 0 : index
    %0 = vector.load %arg0[%c0, %c0_0] : memref<2x256xf32, #tpu.memory_space<vmem>>, vector<2x256xf32>
    %1 = arith.truncf %0 : vector<2x256xf32> to vector<2x256xbf16>
    %c0_1 = arith.constant 0 : index
    %c0_2 = arith.constant 0 : index
    %2 = vector.load %arg1[%c0_1, %c0_2] : memref<256x256xbf16, #tpu.memory_space<vmem>>, vector<256x256xbf16>
    %cst = arith.constant dense<0.000000e+00> : vector<2x256xf32>
    %3 = tpu.matmul %1, %2, %cst {dimension_numbers = #tpu.dot_dimension_numbers<[1], [0], [0], [1], [0, 0, 1, 1], [], []>} : vector<2x256xbf16>, vector<256x256xbf16>, vector<2x256xf32> -> vector<2x256xf32>
    %c0_3 = arith.constant 0 : index
    %c0_4 = arith.constant 0 : index
    %4 = vector.load %arg7[%c0_3, %c0_4] : memref<6x256xf32, #tpu.memory_space<vmem>>, vector<1x256xf32>
    %5 = vector.broadcast %4 : vector<1x256xf32> to vector<2x256xf32>
    %6 = arith.addf %3, %5 : vector<2x256xf32>
    %cst_5 = arith.constant dense<0.000000e+00> : vector<256xf32>
    %7 = vector.multi_reduction <add>, %6, %cst_5 [0] : vector<2x256xf32> to vector<256xf32>
    %8 = vector.shape_cast %7 : vector<256xf32> to vector<1x256xf32>
    %9 = arith.mulf %6, %6 : vector<2x256xf32>
    %cst_6 = arith.constant dense<0.000000e+00> : vector<256xf32>
    %10 = vector.multi_reduction <add>, %9, %cst_6 [0] : vector<2x256xf32> to vector<256xf32>
    %11 = vector.shape_cast %10 : vector<256xf32> to vector<1x256xf32>
    %12 = tpu.concatenate %8, %11 in 0 : vector<1x256xf32>, vector<1x256xf32> -> vector<2x256xf32>
    %c128_i32 = arith.constant 128 : i32
    %13 = tpu.dynamic_rotate %12 by %c128_i32 dim 1 : vector<2x256xf32>, i32 -> vector<2x256xf32>
    %14 = arith.addf %12, %13 : vector<2x256xf32>
    %c64_i32 = arith.constant 64 : i32
    %15 = tpu.dynamic_rotate %14 by %c64_i32 dim 1 : vector<2x256xf32>, i32 -> vector<2x256xf32>
    %16 = arith.addf %14, %15 : vector<2x256xf32>
    %17 = vector.extract_strided_slice %16 {offsets = [0, 0], sizes = [1, 256], strides = [1, 1]} : vector<2x256xf32> to vector<1x256xf32>
    %cst_7 = arith.constant 1.250000e-01 : f32
    %18 = vector.broadcast %cst_7 : f32 to vector<1x256xf32>
    %19 = arith.mulf %17, %18 : vector<1x256xf32>
    %20 = vector.extract_strided_slice %16 {offsets = [1, 0], sizes = [1, 256], strides = [1, 1]} : vector<2x256xf32> to vector<1x256xf32>
    %cst_8 = arith.constant 1.250000e-01 : f32
    %21 = vector.broadcast %cst_8 : f32 to vector<1x256xf32>
    %22 = arith.mulf %20, %21 : vector<1x256xf32>
    %c1 = arith.constant 1 : index
    %c0_9 = arith.constant 0 : index
    %23 = vector.load %arg7[%c1, %c0_9] : memref<6x256xf32, #tpu.memory_space<vmem>>, vector<1x256xf32>
    %24 = arith.mulf %19, %19 : vector<1x256xf32>
    %25 = arith.subf %22, %24 : vector<1x256xf32>
    %cst_10 = arith.constant 9.99999974E-6 : f32
    %26 = vector.broadcast %cst_10 : f32 to vector<1x256xf32>
    %27 = arith.addf %25, %26 : vector<1x256xf32>
    %28 = math.rsqrt %27 : vector<1x256xf32>
    %29 = arith.mulf %23, %28 : vector<1x256xf32>
    %c2 = arith.constant 2 : index
    %c0_11 = arith.constant 0 : index
    %30 = vector.load %arg7[%c2, %c0_11] : memref<6x256xf32, #tpu.memory_space<vmem>>, vector<1x256xf32>
    %31 = arith.mulf %19, %29 : vector<1x256xf32>
    %32 = arith.subf %30, %31 : vector<1x256xf32>
    %33 = vector.broadcast %29 : vector<1x256xf32> to vector<2x256xf32>
    %34 = arith.mulf %6, %33 : vector<2x256xf32>
    %35 = vector.broadcast %32 : vector<1x256xf32> to vector<2x256xf32>
    %36 = arith.addf %34, %35 : vector<2x256xf32>
    %cst_12 = arith.constant 0.000000e+00 : f32
    %37 = vector.broadcast %cst_12 : f32 to vector<2x256xf32>
    %38 = arith.cmpf ogt, %36, %37 : vector<2x256xf32>
    %cst_13 = arith.constant 0.00999999977 : f32
    %39 = vector.broadcast %cst_13 : f32 to vector<2x256xf32>
    %40 = arith.mulf %39, %36 : vector<2x256xf32>
    %41 = arith.select %38, %36, %40 : vector<2x256xi1>, vector<2x256xf32>
    %42 = arith.truncf %41 : vector<2x256xf32> to vector<2x256xbf16>
    %c0_14 = arith.constant 0 : index
    %c0_15 = arith.constant 0 : index
    %43 = vector.load %arg2[%c0_14, %c0_15] : memref<256x64xbf16, #tpu.memory_space<vmem>>, vector<256x64xbf16>
    %cst_16 = arith.constant dense<0.000000e+00> : vector<2x64xf32>
    %44 = tpu.matmul %42, %43, %cst_16 {dimension_numbers = #tpu.dot_dimension_numbers<[1], [0], [0], [1], [0, 0, 1, 1], [], []>} : vector<2x256xbf16>, vector<256x64xbf16>, vector<2x64xf32> -> vector<2x64xf32>
    %c0_17 = arith.constant 0 : index
    %45 = memref.load %arg8[%c0_17] : memref<5xf32, #tpu.memory_space<smem>>
    %46 = vector.broadcast %45 : f32 to vector<2x64xf32>
    %47 = arith.addf %44, %46 : vector<2x64xf32>
    %48 = vector.shape_cast %47 : vector<2x64xf32> to vector<1x2x64xf32>
    %cst_18 = arith.constant dense<0.000000e+00> : vector<1xf32>
    %49 = vector.multi_reduction <add>, %48, %cst_18 [1, 2] : vector<1x2x64xf32> to vector<1xf32>
    %50 = vector.shape_cast %49 : vector<1xf32> to vector<1x1x1xf32>
    %51 = vector.extract %50[0, 0, 0] : f32 from vector<1x1x1xf32>
    %cst_19 = arith.constant 7.812500e-03 : f32
    %52 = arith.mulf %51, %cst_19 : f32
    %53 = arith.mulf %47, %47 : vector<2x64xf32>
    %54 = vector.shape_cast %53 : vector<2x64xf32> to vector<1x2x64xf32>
    %cst_20 = arith.constant dense<0.000000e+00> : vector<1xf32>
    %55 = vector.multi_reduction <add>, %54, %cst_20 [1, 2] : vector<1x2x64xf32> to vector<1xf32>
    %56 = vector.shape_cast %55 : vector<1xf32> to vector<1x1x1xf32>
    %57 = vector.extract %56[0, 0, 0] : f32 from vector<1x1x1xf32>
    %cst_21 = arith.constant 7.812500e-03 : f32
    %58 = arith.mulf %57, %cst_21 : f32
    %59 = arith.mulf %52, %52 : f32
    %60 = arith.subf %58, %59 : f32
    %c1_22 = arith.constant 1 : index
    %61 = memref.load %arg8[%c1_22] : memref<5xf32, #tpu.memory_space<smem>>
    %62 = vector.broadcast %52 : f32 to vector<2x64xf32>
    %63 = arith.subf %47, %62 : vector<2x64xf32>
    %64 = vector.broadcast %61 : f32 to vector<2x64xf32>
    %65 = arith.mulf %64, %63 : vector<2x64xf32>
    %cst_23 = arith.constant 9.99999974E-6 : f32
    %66 = arith.addf %60, %cst_23 : f32
    %67 = math.rsqrt %66 : f32
    %68 = vector.broadcast %67 : f32 to vector<2x64xf32>
    %69 = arith.mulf %65, %68 : vector<2x64xf32>
    %c2_24 = arith.constant 2 : index
    %70 = memref.load %arg8[%c2_24] : memref<5xf32, #tpu.memory_space<smem>>
    %71 = vector.broadcast %70 : f32 to vector<2x64xf32>
    %72 = arith.addf %69, %71 : vector<2x64xf32>
    %73 = arith.negf %72 : vector<2x64xf32>
    %74 = math.exp %73 : vector<2x64xf32>
    %cst_25 = arith.constant 1.000000e+00 : f32
    %75 = vector.broadcast %cst_25 : f32 to vector<2x64xf32>
    %76 = arith.addf %75, %74 : vector<2x64xf32>
    %77 = arith.divf %75, %76 : vector<2x64xf32>
    %c0_26 = arith.constant 0 : index
    %c0_27 = arith.constant 0 : index
    %78 = vector.load %arg4[%c0_26, %c0_27] : memref<64x8xf32, #tpu.memory_space<vmem>>, vector<64x8xf32>
    %cst_28 = arith.constant dense<0.000000e+00> : vector<2x8xf32>
    %79 = tpu.matmul %77, %78, %cst_28 {dimension_numbers = #tpu.dot_dimension_numbers<[1], [0], [0], [1], [0, 0, 1, 1], [], []>} : vector<2x64xf32>, vector<64x8xf32>, vector<2x8xf32> -> vector<2x8xf32>
    %80 = vector.extract_strided_slice %79 {offsets = [0, 0], sizes = [2, 1], strides = [1, 1]} : vector<2x8xf32> to vector<2x1xf32>
    %c3 = arith.constant 3 : index
    %81 = memref.load %arg8[%c3] : memref<5xf32, #tpu.memory_space<smem>>
    %82 = vector.broadcast %81 : f32 to vector<2x1xf32>
    %83 = arith.addf %80, %82 : vector<2x1xf32>
    %84 = arith.negf %83 : vector<2x1xf32>
    %85 = math.exp %84 : vector<2x1xf32>
    %cst_29 = arith.constant 1.000000e+00 : f32
    %86 = vector.broadcast %cst_29 : f32 to vector<2x1xf32>
    %87 = arith.addf %86, %85 : vector<2x1xf32>
    %88 = arith.divf %86, %87 : vector<2x1xf32>
    %89 = vector.shape_cast %88 : vector<2x1xf32> to vector<1x2x1xf32>
    %cst_30 = arith.constant dense<0.000000e+00> : vector<1xf32>
    %90 = vector.multi_reduction <add>, %89, %cst_30 [1, 2] : vector<1x2x1xf32> to vector<1xf32>
    %91 = vector.shape_cast %90 : vector<1xf32> to vector<1x1x1xf32>
    %92 = vector.extract %91[0, 0, 0] : f32 from vector<1x1x1xf32>
    %cst_31 = arith.constant 5.000000e-01 : f32
    %93 = arith.mulf %92, %cst_31 : f32
    %94 = vector.extract_strided_slice %79 {offsets = [0, 1], sizes = [2, 1], strides = [1, 1]} : vector<2x8xf32> to vector<2x1xf32>
    %c4 = arith.constant 4 : index
    %95 = memref.load %arg8[%c4] : memref<5xf32, #tpu.memory_space<smem>>
    %96 = vector.broadcast %95 : f32 to vector<2x1xf32>
    %97 = arith.addf %94, %96 : vector<2x1xf32>
    %98 = arith.negf %97 : vector<2x1xf32>
    %99 = math.exp %98 : vector<2x1xf32>
    %cst_32 = arith.constant 1.000000e+00 : f32
    %100 = vector.broadcast %cst_32 : f32 to vector<2x1xf32>
    %101 = arith.addf %100, %99 : vector<2x1xf32>
    %102 = arith.divf %100, %101 : vector<2x1xf32>
    %103 = vector.shape_cast %102 : vector<2x1xf32> to vector<1x2x1xf32>
    %cst_33 = arith.constant dense<0.000000e+00> : vector<1xf32>
    %104 = vector.multi_reduction <add>, %103, %cst_33 [1, 2] : vector<1x2x1xf32> to vector<1xf32>
    %105 = vector.shape_cast %104 : vector<1xf32> to vector<1x1x1xf32>
    %106 = vector.extract %105[0, 0, 0] : f32 from vector<1x1x1xf32>
    %cst_34 = arith.constant 5.000000e-01 : f32
    %107 = arith.mulf %106, %cst_34 : f32
    %cst_35 = arith.constant 1.000000e+00 : f32
    %108 = vector.broadcast %cst_35 : f32 to vector<2x64xf32>
    %109 = vector.broadcast %93 : f32 to vector<2x64xf32>
    %110 = arith.cmpf ogt, %77, %109 : vector<2x64xf32>
    %111 = arith.extui %110 : vector<2x64xi1> to vector<2x64xi32>
    %112 = arith.sitofp %111 : vector<2x64xi32> to vector<2x64xf32>
    %113 = arith.mulf %108, %112 : vector<2x64xf32>
    %114 = arith.mulf %113, %77 : vector<2x64xf32>
    %cst_36 = arith.constant 1.000000e+00 : f32
    %115 = vector.broadcast %cst_36 : f32 to vector<2x64xf32>
    %116 = arith.subf %115, %112 : vector<2x64xf32>
    %117 = arith.mulf %108, %116 : vector<2x64xf32>
    %118 = vector.broadcast %107 : f32 to vector<2x64xf32>
    %119 = arith.cmpf ogt, %77, %118 : vector<2x64xf32>
    %120 = arith.extui %119 : vector<2x64xi1> to vector<2x64xi32>
    %121 = arith.sitofp %120 : vector<2x64xi32> to vector<2x64xf32>
    %122 = arith.mulf %117, %121 : vector<2x64xf32>
    %123 = arith.mulf %122, %77 : vector<2x64xf32>
    %cst_37 = arith.constant 1.000000e+00 : f32
    %124 = vector.broadcast %cst_37 : f32 to vector<2x64xf32>
    %125 = arith.subf %124, %121 : vector<2x64xf32>
    %126 = arith.mulf %117, %125 : vector<2x64xf32>
    %cst_38 = arith.constant 1.000000e-07 : f32
    %127 = vector.broadcast %cst_38 : f32 to vector<2x64xf32>
    %128 = arith.cmpf ogt, %77, %127 : vector<2x64xf32>
    %129 = arith.extui %128 : vector<2x64xi1> to vector<2x64xi32>
    %130 = arith.sitofp %129 : vector<2x64xi32> to vector<2x64xf32>
    %131 = arith.mulf %126, %130 : vector<2x64xf32>
    %132 = arith.mulf %131, %77 : vector<2x64xf32>
    %133 = tpu.concatenate %114, %123, %132 in 1 : vector<2x64xf32>, vector<2x64xf32>, vector<2x64xf32> -> vector<2x192xf32>
    %134 = arith.truncf %133 : vector<2x192xf32> to vector<2x192xbf16>
    %c0_39 = arith.constant 0 : index
    %c0_40 = arith.constant 0 : index
    %135 = vector.load %arg3[%c0_39, %c0_40] : memref<192x256xbf16, #tpu.memory_space<vmem>>, vector<192x256xbf16>
    %cst_41 = arith.constant dense<0.000000e+00> : vector<2x256xf32>
    %136 = tpu.matmul %134, %135, %cst_41 {dimension_numbers = #tpu.dot_dimension_numbers<[1], [0], [0], [1], [0, 0, 1, 1], [], []>} : vector<2x192xbf16>, vector<192x256xbf16>, vector<2x256xf32> -> vector<2x256xf32>
    %c3_42 = arith.constant 3 : index
    %c0_43 = arith.constant 0 : index
    %137 = vector.load %arg7[%c3_42, %c0_43] : memref<6x256xf32, #tpu.memory_space<vmem>>, vector<1x256xf32>
    %138 = vector.broadcast %137 : vector<1x256xf32> to vector<2x256xf32>
    %139 = arith.addf %136, %138 : vector<2x256xf32>
    %cst_44 = arith.constant dense<0.000000e+00> : vector<256xf32>
    %140 = vector.multi_reduction <add>, %139, %cst_44 [0] : vector<2x256xf32> to vector<256xf32>
    %141 = vector.shape_cast %140 : vector<256xf32> to vector<1x256xf32>
    %142 = arith.mulf %139, %139 : vector<2x256xf32>
    %cst_45 = arith.constant dense<0.000000e+00> : vector<256xf32>
    %143 = vector.multi_reduction <add>, %142, %cst_45 [0] : vector<2x256xf32> to vector<256xf32>
    %144 = vector.shape_cast %143 : vector<256xf32> to vector<1x256xf32>
    %145 = tpu.concatenate %141, %144 in 0 : vector<1x256xf32>, vector<1x256xf32> -> vector<2x256xf32>
    %c0_46 = arith.constant 0 : index
    %c0_47 = arith.constant 0 : index
    %146 = vector.load %arg5[%c0_46, %c0_47] : memref<256x8xf32, #tpu.memory_space<vmem>>, vector<256x8xf32>
    %cst_48 = arith.constant dense<0.000000e+00> : vector<2x8xf32>
    %147 = tpu.matmul %145, %146, %cst_48 {dimension_numbers = #tpu.dot_dimension_numbers<[1], [0], [0], [1], [0, 0, 1, 1], [], []>} : vector<2x256xf32>, vector<256x8xf32>, vector<2x8xf32> -> vector<2x8xf32>
    %cst_49 = arith.constant 7.812500e-03 : f32
    %148 = vector.broadcast %cst_49 : f32 to vector<2x8xf32>
    %149 = arith.mulf %147, %148 : vector<2x8xf32>
    %150 = vector.extract_strided_slice %149 {offsets = [0, 0], sizes = [1, 8], strides = [1, 1]} : vector<2x8xf32> to vector<1x8xf32>
    %151 = vector.extract_strided_slice %149 {offsets = [1, 0], sizes = [1, 8], strides = [1, 1]} : vector<2x8xf32> to vector<1x8xf32>
    %152 = arith.mulf %150, %150 : vector<1x8xf32>
    %153 = arith.subf %151, %152 : vector<1x8xf32>
    %154 = tpu.concatenate %150, %153 in 0 : vector<1x8xf32>, vector<1x8xf32> -> vector<2x8xf32>
    %c0_50 = arith.constant 0 : index
    %c0_51 = arith.constant 0 : index
    %155 = vector.load %arg6[%c0_50, %c0_51] : memref<8x256xf32, #tpu.memory_space<vmem>>, vector<8x256xf32>
    %cst_52 = arith.constant dense<0.000000e+00> : vector<2x256xf32>
    %156 = tpu.matmul %154, %155, %cst_52 {dimension_numbers = #tpu.dot_dimension_numbers<[1], [0], [0], [1], [0, 0, 1, 1], [], []>} : vector<2x8xf32>, vector<8x256xf32>, vector<2x256xf32> -> vector<2x256xf32>
    %157 = vector.extract_strided_slice %156 {offsets = [1, 0], sizes = [1, 256], strides = [1, 1]} : vector<2x256xf32> to vector<1x256xf32>
    %cst_53 = arith.constant 9.99999974E-6 : f32
    %158 = vector.broadcast %cst_53 : f32 to vector<1x256xf32>
    %159 = arith.addf %157, %158 : vector<1x256xf32>
    %160 = math.rsqrt %159 : vector<1x256xf32>
    %161 = vector.extract_strided_slice %156 {offsets = [0, 0], sizes = [1, 256], strides = [1, 1]} : vector<2x256xf32> to vector<1x256xf32>
    %162 = vector.broadcast %161 : vector<1x256xf32> to vector<2x256xf32>
    %163 = arith.subf %139, %162 : vector<2x256xf32>
    %c4_54 = arith.constant 4 : index
    %c0_55 = arith.constant 0 : index
    %164 = vector.load %arg7[%c4_54, %c0_55] : memref<6x256xf32, #tpu.memory_space<vmem>>, vector<1x256xf32>
    %165 = arith.mulf %164, %160 : vector<1x256xf32>
    %166 = vector.broadcast %165 : vector<1x256xf32> to vector<2x256xf32>
    %167 = arith.mulf %163, %166 : vector<2x256xf32>
    %c5 = arith.constant 5 : index
    %c0_56 = arith.constant 0 : index
    %168 = vector.load %arg7[%c5, %c0_56] : memref<6x256xf32, #tpu.memory_space<vmem>>, vector<1x256xf32>
    %169 = vector.broadcast %168 : vector<1x256xf32> to vector<2x256xf32>
    %170 = arith.addf %167, %169 : vector<2x256xf32>
    %cst_57 = arith.constant 0.000000e+00 : f32
    %171 = vector.broadcast %cst_57 : f32 to vector<2x256xf32>
    %172 = arith.cmpf ogt, %170, %171 : vector<2x256xf32>
    %cst_58 = arith.constant 0.00999999977 : f32
    %173 = vector.broadcast %cst_58 : f32 to vector<2x256xf32>
    %174 = arith.mulf %173, %170 : vector<2x256xf32>
    %175 = arith.select %172, %170, %174 : vector<2x256xi1>, vector<2x256xf32>
    %c0_59 = arith.constant 0 : index
    %c0_60 = arith.constant 0 : index
    %176 = vector.load %arg9[%c0_59, %c0_60] : memref<2x256xf32, #tpu.memory_space<vmem>>, vector<2x256xf32>
    tpu.vector_store %arg9[%c0_59, %c0_60], %175 {strides = array<i32>} : memref<2x256xf32, #tpu.memory_space<vmem>>, vector<2x256xf32>,
    return
  }
}

</mosaic_0001>

<bundles_post_ra>
// kernel: map_forward.1
= control target key start
LH: loop header
LB: loop body
LE: loop exit
PB: predicated region body
PF: predicated region fallthrough
CT: control target
= control target key end

     0   :  { %14 = vsyncpa [#allocation3], 0  ;;  %s1616_s12 = smov [#allocation2]   ;;  %s2269_s0 = inlined_call_operand.vmem [shape: f32[2,256], index: 0, kind: input, shape index: {}]   ;;  %s2270_s1 = inlined_call_operand.vmem [shape: bf16[256,256], index: 1, kind: input, shape index: {}]   ;;  %s2271_s2 = inlined_call_operand.vmem [shape: bf16[256,64], index: 2, kind: input, shape index: {}]   ;;  %s2272_s3 = inlined_call_operand.vmem [shape: bf16[192,256], index: 3, kind: input, shape index: {}]   ;;  %s2273_s4 = inlined_call_operand.vmem [shape: f32[64,8], index: 4, kind: input, shape index: {}]   ;;  %s2274_s5 = inlined_call_operand.vmem [shape: f32[256,8], index: 5, kind: input, shape index: {}]   ;;  %s2275_s6 = inlined_call_operand.vmem [shape: f32[8,256], index: 6, kind: input, shape index: {}]   ;;  %s2276_s7 = inlined_call_operand.vmem [shape: f32[6,256], index: 7, kind: input, shape index: {}]   ;;  %s2277_s8 = inlined_call_operand.vmem [shape: f32[5], index: 8, kind: input, shape index: {}]   ;;  %s2278_s9 = inlined_call_operand.vmem [shape: f32[2,256], index: 9, kind: output, shape index: {}]  }
   0x1   :  { %s36_s11 = sshll.u32 %s2277_s8, 4  ;;  %s37_s11 = int_to_ptr.vmem [resolvable:$true] %s36_s11 }
   0x2   :  { %39 = dma.vmem_to_smem %s37_s11, 16, %s1616_s12, [#allocation3]  }
   0x3   :  { %1614 = dma.done.wait [#allocation3], 16  }
   0x4   :  { %1615 = vsyncadd [#allocation3], 4294967280 }
   0x5   :  { %44 = sfence }
   0x6   :  { %v1246_v0 = vld [vmem:[%s2270_s1 + $0x70] sm:$0xf]  ;;  %v1511_v1 = vld [vmem:[%s2270_s1 + $0x74] sm:$0xf0]  ;;  %v1510_v5 = vld [vmem:[%s2270_s1 + $0x74] sm:$0xf] }
   0x7   :  { %v1310_v2 = vld [vmem:[%s2270_s1 + $0xf0] sm:$0xf]  ;;  %v1247_v3 = vor.u32 %v1511_v1, %v1246_v0  ;;  %v1527_v4 = vld [vmem:[%s2270_s1 + $0xf4] sm:$0xf0]  ;;  %v1248_v6 = vld [vmem:[%s2270_s1 + $0x78] sm:$0xf0] }
   0x8   :  { %v1311_v7 = vor.u32 %v1527_v4, %v1310_v2  ;;  %v1251_v8 = vor.u32 %v1510_v5, %v1248_v6  ;;  %v1526_v9 = vld [vmem:[%s2270_s1 + $0xf4] sm:$0xf]  ;;  %v1312_v10 = vld [vmem:[%s2270_s1 + $0xf8] sm:$0xf0]  ;;  %v1238_v11 = vld [vmem:[%s2270_s1 + $0x60] sm:$0xf] }
   0x9   :  { %253 = vmatpush.bf16.msra.mxu0 %v1247_v3  ;;  %v1315_v12 = vor.u32 %v1526_v9, %v1312_v10  ;;  %v1509_v13 = vld [vmem:[%s2270_s1 + $0x64] sm:$0xf0]  ;;  %v1302_v14 = vld [vmem:[%s2270_s1 + $0xe0] sm:$0xf]  ;;  %v1508_v18 = vld [vmem:[%s2270_s1 + $0x64] sm:$0xf] }
   0xa   :  { %v1525_v15 = vld [vmem:[%s2270_s1 + $0xe4] sm:$0xf0]  ;;  %266 = vmatpush.bf16.msra.mxu1 %v1311_v7  ;;  %279 = vmatpush.bf16.msra.mxu2 %v1251_v8  ;;  %v1239_v16 = vor.u32 %v1509_v13, %v1238_v11  ;;  %v1240_v19 = vld [vmem:[%s2270_s1 + $0x68] sm:$0xf0]  ;;  %v1524_v20 = vld [vmem:[%s2270_s1 + $0xe4] sm:$0xf] }
   0xb   :  { %v1303_v17 = vor.u32 %v1525_v15, %v1302_v14  ;;  %292 = vmatpush.bf16.msra.mxu3 %v1315_v12  ;;  %v1243_v21 = vor.u32 %v1508_v18, %v1240_v19  ;;  %v1304_v22 = vld [vmem:[%s2270_s1 + $0xe8] sm:$0xf0]  ;;  %v1230_v23 = vld [vmem:[%s2270_s1 + $0x50] sm:$0xf]  ;;  %v1507_v24 = vld [vmem:[%s2270_s1 + $0x54] sm:$0xf0] }
   0xc   :  { %v1307_v25 = vor.u32 %v1524_v20, %v1304_v22  ;;  %v1294_v26 = vld [vmem:[%s2270_s1 + $0xd0] sm:$0xf]  ;;  %v1523_v27 = vld [vmem:[%s2270_s1 + $0xd4] sm:$0xf0]  ;;  %v1506_v28 = vld [vmem:[%s2270_s1 + $0x54] sm:$0xf]  ;;  %v1231_v29 = vor.u32 %v1507_v24, %v1230_v23 }
   0xd   :  { %254 = vmatpush.bf16.msra.mxu0 %v1239_v16  ;;  %v1232_v30 = vld [vmem:[%s2270_s1 + $0x58] sm:$0xf0]  ;;  %v1522_v31 = vld [vmem:[%s2270_s1 + $0xd4] sm:$0xf]  ;;  %v1295_v33 = vor.u32 %v1523_v27, %v1294_v26  ;;  %v1222_v35 = vld [vmem:[%s2270_s1 + $0x40] sm:$0xf] }
   0xe   :  { %v1296_v32 = vld [vmem:[%s2270_s1 + $0xd8] sm:$0xf0]  ;;  %267 = vmatpush.bf16.msra.mxu1 %v1303_v17  ;;  %280 = vmatpush.bf16.msra.mxu2 %v1243_v21  ;;  %v1235_v34 = vor.u32 %v1506_v28, %v1232_v30  ;;  %v1505_v36 = vld [vmem:[%s2270_s1 + $0x44] sm:$0xf0]  ;;  %v1286_v37 = vld [vmem:[%s2270_s1 + $0xc0] sm:$0xf] }
   0xf   :  { %293 = vmatpush.bf16.msra.mxu3 %v1307_v25  ;;  %v1299_v38 = vor.u32 %v1522_v31, %v1296_v32  ;;  %v1521_v39 = vld [vmem:[%s2270_s1 + $0xc4] sm:$0xf0]  ;;  %v1504_v40 = vld [vmem:[%s2270_s1 + $0x44] sm:$0xf]  ;;  %v1224_v41 = vld [vmem:[%s2270_s1 + $0x48] sm:$0xf0]  ;;  %v1223_v44 = vor.u32 %v1505_v36, %v1222_v35 }
  0x10   :  { %v1520_v42 = vld [vmem:[%s2270_s1 + $0xc4] sm:$0xf]  ;;  %v1288_v43 = vld [vmem:[%s2270_s1 + $0xc8] sm:$0xf0]  ;;  %v1287_v45 = vor.u32 %v1521_v39, %v1286_v37  ;;  %v1227_v46 = vor.u32 %v1504_v40, %v1224_v41  ;;  %v1214_v47 = vld [vmem:[%s2270_s1 + $0x30] sm:$0xf] }
  0x11   :  { %255 = vmatpush.bf16.msra.mxu0 %v1231_v29  ;;  %v1503_v48 = vld [vmem:[%s2270_s1 + $0x34] sm:$0xf0]  ;;  %v1278_v49 = vld [vmem:[%s2270_s1 + $0xb0] sm:$0xf]  ;;  %v1291_v50 = vor.u32 %v1520_v42, %v1288_v43  ;;  %v1502_v52 = vld [vmem:[%s2270_s1 + $0x34] sm:$0xf] }
  0x12   :  { %268 = vmatpush.bf16.msra.mxu1 %v1295_v33  ;;  %281 = vmatpush.bf16.msra.mxu2 %v1235_v34  ;;  %v1519_v51 = vld [vmem:[%s2270_s1 + $0xb4] sm:$0xf0]  ;;  %v1216_v53 = vld [vmem:[%s2270_s1 + $0x38] sm:$0xf0]  ;;  %v1518_v54 = vld [vmem:[%s2270_s1 + $0xb4] sm:$0xf]  ;;  %v1215_v56 = vor.u32 %v1503_v48, %v1214_v47 }
  0x13   :  { %294 = vmatpush.bf16.msra.mxu3 %v1299_v38  ;;  %v1280_v55 = vld [vmem:[%s2270_s1 + $0xb8] sm:$0xf0]  ;;  %v1279_v57 = vor.u32 %v1519_v51, %v1278_v49  ;;  %v1219_v58 = vor.u32 %v1502_v52, %v1216_v53  ;;  %v1206_v59 = vld [vmem:[%s2270_s1 + $0x20] sm:$0xf]  ;;  %v1501_v60 = vld [vmem:[%s2270_s1 + $0x24] sm:$0xf0] }
  0x14   :  { %v1270_v61 = vld [vmem:[%s2270_s1 + $0xa0] sm:$0xf]  ;;  %v1283_v62 = vor.u32 %v1518_v54, %v1280_v55  ;;  %v1517_v63 = vld [vmem:[%s2270_s1 + $0xa4] sm:$0xf0]  ;;  %v1500_v0 = vld [vmem:[%s2270_s1 + $0x24] sm:$0xf]  ;;  %v1207_v4 = vor.u32 %v1501_v60, %v1206_v59 }
  0x15   :  { %256 = vmatpush.bf16.msra.mxu0 %v1223_v44  ;;  %v1208_v1 = vld [vmem:[%s2270_s1 + $0x28] sm:$0xf0]  ;;  %v1516_v2 = vld [vmem:[%s2270_s1 + $0xa4] sm:$0xf]  ;;  %v1198_v5 = vld [vmem:[%s2270_s1 + $0x10] sm:$0xf]  ;;  %v1271_v6 = vor.u32 %v1517_v63, %v1270_v61 }
  0x16   :  { %269 = vmatpush.bf16.msra.mxu1 %v1287_v45  ;;  %282 = vmatpush.bf16.msra.mxu2 %v1227_v46  ;;  %v1272_v3 = vld [vmem:[%s2270_s1 + $0xa8] sm:$0xf0]  ;;  %v1211_v7 = vor.u32 %v1500_v0, %v1208_v1  ;;  %v1499_v8 = vld [vmem:[%s2270_s1 + $0x14] sm:$0xf0]  ;;  %v1262_v9 = vld [vmem:[%s2270_s1 + $0x90] sm:$0xf] }
  0x17   :  { %295 = vmatpush.bf16.msra.mxu3 %v1291_v50  ;;  %v1515_v10 = vld [vmem:[%s2270_s1 + $0x94] sm:$0xf0]  ;;  %v1275_v11 = vor.u32 %v1516_v2, %v1272_v3  ;;  %v1498_v12 = vld [vmem:[%s2270_s1 + $0x14] sm:$0xf]  ;;  %v1200_v13 = vld [vmem:[%s2270_s1 + $0x18] sm:$0xf0]  ;;  %v1199_v17 = vor.u32 %v1499_v8, %v1198_v5 }
  0x18   :  { %v46_v14 = vld [vmem:[%s2269_s0] sm:$0xf]  ;;  %v1514_v15 = vld [vmem:[%s2270_s1 + $0x94] sm:$0xf]  ;;  %v1264_v16 = vld [vmem:[%s2270_s1 + $0x98] sm:$0xf0]  ;;  %v1263_v18 = vor.u32 %v1515_v10, %v1262_v9  ;;  %v1203_v19 = vor.u32 %v1498_v12, %v1200_v13 }
  0x19   :  { %257 = vmatpush.bf16.msra.mxu0 %v1215_v56  ;;  %48 = vst [vmem:[#allocation1] ss:$4 sm:$0xff] %v46_v14  ;;  %v1190_v20 = vld [vmem:[%s2270_s1] sm:$0xf]  ;;  %v1497_v21 = vld [vmem:[%s2270_s1 + $0x4] sm:$0xf0]  ;;  %v1267_v23 = vor.u32 %v1514_v15, %v1264_v16 }
  0x1a   :  { %270 = vmatpush.bf16.msra.mxu1 %v1279_v57  ;;  %283 = vmatpush.bf16.msra.mxu2 %v1219_v58  ;;  %v1254_v22 = vld [vmem:[%s2270_s1 + $0x80] sm:$0xf]  ;;  %v1513_v24 = vld [vmem:[%s2270_s1 + $0x84] sm:$0xf0]  ;;  %v1496_v25 = vld [vmem:[%s2270_s1 + $0x4] sm:$0xf]  ;;  %v1191_v29 = vor.u32 %v1497_v21, %v1190_v20 }
  0x1b   :  { %296 = vmatpush.bf16.msra.mxu3 %v1283_v62  ;;  %v1192_v26 = vld [vmem:[%s2270_s1 + $0x8] sm:$0xf0]  ;;  %v1512_v27 = vld [vmem:[%s2270_s1 + $0x84] sm:$0xf]  ;;  %v1255_v30 = vor.u32 %v1513_v24, %v1254_v22  ;;  %vm305_vm0 = vcmask 1041408   ;;  %vm336_vm1 = vcmask 1040384  }
  0x1c   :  { %v1256_v28 = vld [vmem:[%s2270_s1 + $0x88] sm:$0xf0]  ;;  %v1195_v31 = vor.u32 %v1496_v25, %v1192_v26  ;;  %v87_v37 = vld [vmem:[%s2276_s7] ss:$8 sm:$0x3]  ;;  %s1617_s11 = smov 64  }
  0x1d   :  { %258 = vmatpush.bf16.msra.mxu0 %v1207_v4  ;;  %v1259_v32 = vor.u32 %v1512_v27, %v1256_v28  ;;  %v89_v38 = vperm.slane %v87_v37, 0  ;;  %v90_v43 = vperm.slane %v87_v37, 1  ;;  %v1535_v21 = vld [vmem:[%s2271_s2 + $0x38] sm:$0xff]  ;;  %v1542_v24 = vld [vmem:[%s2271_s2 + $0x70] sm:$0xff]  ;;  %v1533_v28 = vld [vmem:[%s2271_s2 + $0x28] sm:$0xff]  ;;  %s435_s22 = sld [smem:[#allocation2]] }
  0x1e   :  { %271 = vmatpush.bf16.msra.mxu1 %v1271_v6  ;;  %284 = vmatpush.bf16.msra.mxu2 %v1211_v7  ;;  %v1543_v22 = vld [vmem:[%s2271_s2 + $0x78] sm:$0xff]  ;;  %vm559_vm7 = vcmask 517120   ;;  %s1382_s13 = sld [smem:[#allocation2 + $0x1]]  ;;  %vm635_vm14 = vcmask 523264  }
  0x1f   :  { %297 = vmatpush.bf16.msra.mxu3 %v1275_v11  ;;  %v1539_v37 = vld [vmem:[%s2271_s2 + $0x58] sm:$0xff]  ;;  %s1383_s18 = sld [smem:[#allocation2 + $0x2]] }
  0x20   :  { %v49_v33 = vld.sshfl [vmem:[#allocation1] sm:$0xff pattern:$0x73625140]  ;;  %v50_v34 = vld.sshfl [vmem:[#allocation1 + $0x8] sm:$0xff pattern:$0x73625140] }
  0x21   :  { %259 = vmatpush.bf16.msra.mxu0 %v1199_v17  ;;  %v53_v35 = vpack.c.bf16 %v49_v33, %v49_v33  ;;  %v54_v36 = vpack.c.bf16 %v50_v34, %v50_v34  ;;  %v1540_v33 = vld [vmem:[%s2271_s2 + $0x60] sm:$0xff] }
  0x22   :  { %272 = vmatpush.bf16.msra.mxu1 %v1263_v18  ;;  %285 = vmatpush.bf16.msra.mxu2 %v1203_v19 }
  0x23   :  { %298 = vmatpush.bf16.msra.mxu3 %v1267_v23  ;;  %v1534_v23 = vld [vmem:[%s2271_s2 + $0x30] sm:$0xff] }
  0x25   :  { %260 = vmatpush.bf16.msra.mxu0 %v1191_v29  ;;  %v1541_v29 = vld [vmem:[%s2271_s2 + $0x68] sm:$0xff] }
  0x26   :  { %273 = vmatpush.bf16.msra.mxu1 %v1255_v30  ;;  %286 = vmatpush.bf16.msra.mxu2 %v1195_v31 }
  0x27   :  { %299 = vmatpush.bf16.msra.mxu3 %v1259_v32  ;;  %v1532_v32 = vld [vmem:[%s2271_s2 + $0x20] sm:$0xff] }
  0x28   :  { %261 = vmatmul.bf16.vlgmr.msra.gmra.mxu0 %v53_v35 }
  0x29   :  { %274 = vmatmul.bf16.vlgmr.msra.gmra.mxu1 %v54_v36  ;;  %287 = vmatmul.bf16.vlgmr.msra.gmra.mxu2 %v53_v35 }
  0x2a   :  { %300 = vmatmul.bf16.vlgmr.msra.gmra.mxu3 %v54_v36  ;;  %533 = vmatpush.bf16.msrb.mxu0 %v1535_v21  ;;  %v1531_v36 = vld [vmem:[%s2271_s2 + $0x18] sm:$0xff] }
  0x2b   :  { %546 = vmatpush.bf16.msrb.mxu1 %v1543_v22 }
  0x2e   :  { %534 = vmatpush.bf16.msrb.mxu0 %v1534_v23 }
  0x2f   :  { %547 = vmatpush.bf16.msrb.mxu1 %v1542_v24 }
  0x32   :  { %535 = vmatpush.bf16.msrb.mxu0 %v1533_v28 }
  0x33   :  { %548 = vmatpush.bf16.msrb.mxu1 %v1541_v29 }
  0x36   :  { %536 = vmatpush.bf16.msrb.mxu0 %v1532_v32 }
  0x37   :  { %549 = vmatpush.bf16.msrb.mxu1 %v1540_v33 }
  0x3a   :  { %537 = vmatpush.bf16.msrb.mxu0 %v1531_v36 }
  0x3b   :  { %550 = vmatpush.bf16.msrb.mxu1 %v1539_v37 }
  0xa5   :  { %v262_v39 = vpop.f32.mrf.mxu0 }
  0xa6   :  { %v263_v40 = vadd.f32 %v262_v39, %v89_v38  ;;  %v275_v41 = vpop.f32.mrf.mxu1  ;;  %v1530_v38 = vld [vmem:[%s2271_s2 + $0x10] sm:$0xff] }
  0xa7   :  { %v1538_v39 = vld [vmem:[%s2271_s2 + $0x50] sm:$0xff]  ;;  %538 = vmatpush.bf16.msrb.mxu0 %v1530_v38 }
  0xa8   :  { %v1871_v42 = vadd.f32 %v275_v41, %v263_v40  ;;  %551 = vmatpush.bf16.msrb.mxu1 %v1538_v39  ;;  %v1529_v40 = vld [vmem:[%s2271_s2 + $0x8] sm:$0xff] }
  0xa9   :  { %v1537_v41 = vld [vmem:[%s2271_s2 + $0x48] sm:$0xff] }
  0xaa   :  { %v306_v44 = vsel %vm305_vm0, %v1871_v42, 0.0  ;;  %v320_v45 = vmul.f32 %v1871_v42, %v1871_v42 }
  0xab   :  { %v307_v46 = vrot.slane %v306_v44, 4  ;;  %539 = vmatpush.bf16.msrb.mxu0 %v1529_v40 }
  0xac   :  { %v322_v47 = vsel %vm305_vm0, %v320_v45, 0.0  ;;  %v288_v48 = vpop.f32.mrf.mxu2  ;;  %552 = vmatpush.bf16.msrb.mxu1 %v1537_v41  ;;  %v1528_v45 = vld [vmem:[%s2271_s2] sm:$0xff] }
  0xad   :  { %v323_v49 = vrot.slane %v322_v47, 4  ;;  %v289_v50 = vadd.f32 %v288_v48, %v90_v43  ;;  %v301_v51 = vpop.f32.mrf.mxu3  ;;  %v264_v52 = vpop.f32.mrf.mxu0  ;;  %v308_v53 = vadd.f32 %v307_v46, %v306_v44  ;;  %v1536_v46 = vld [vmem:[%s2271_s2 + $0x40] sm:$0xff] }
  0xae   :  { %v277_v54 = vpop.f32.mrf.mxu1  ;;  %v1316_v52 = vld [vmem:[%s2276_s7 + $0x1] ss:$8 sm:$0x3] }
  0xaf   :  { %v324_v55 = vadd.f32 %v323_v49, %v322_v47  ;;  %v1878_v56 = vadd.f32 %v301_v51, %v289_v50  ;;  %v309_v60 = vrot.slane %v308_v53, 2  ;;  %540 = vmatpush.bf16.msrb.mxu0 %v1528_v45  ;;  %v632_v45 = vld [vmem:[%s2273_s4 + $0x28] sm:$0xff] }
  0xb0   :  { %553 = vmatpush.bf16.msrb.mxu1 %v1536_v46  ;;  %v631_v46 = vld [vmem:[%s2273_s4 + $0x20] sm:$0xff] }
  0xb1   :  { %v325_v57 = vrot.slane %v324_v55, 2  ;;  %v313_v58 = vsel %vm305_vm0, %v1878_v56, 0.0  ;;  %v321_v59 = vmul.f32 %v1878_v56, %v1878_v56  ;;  %v310_v4 = vadd.f32 %v309_v60, %v308_v53 }
  0xb2   :  { %v314_v61 = vrot.slane %v313_v58, 4 }
  0xb3   :  { %v329_v62 = vsel %vm305_vm0, %v321_v59, 0.0  ;;  %v326_v2 = vadd.f32 %v325_v57, %v324_v55  ;;  %v311_v10 = vrot.slane %v310_v4, 1 }
  0xb4   :  { %v315_v63 = vadd.f32 %v314_v61, %v313_v58  ;;  %v330_v0 = vrot.slane %v329_v62, 4  ;;  %v290_v1 = vpop.f32.mrf.mxu2  ;;  %v1317_v61 = vld [vmem:[%s2276_s7 + $0x2] ss:$8 sm:$0x3] }
  0xb5   :  { %v303_v3 = vpop.f32.mrf.mxu3  ;;  %v327_v9 = vrot.slane %v326_v2, 1  ;;  %v312_v15 = vadd.f32 %v311_v10, %v310_v4 }
  0xb6   :  { %v316_v5 = vrot.slane %v315_v63, 2  ;;  %v331_v6 = vadd.f32 %v330_v0, %v329_v62 }
  0xb7   :  { %v328_v13 = vadd.f32 %v327_v9, %v326_v2 }
  0xb8   :  { %v317_v7 = vadd.f32 %v316_v5, %v315_v63  ;;  %v332_v8 = vrot.slane %v331_v6, 2 }
  0xb9   :  { %v337_v18 = vsel %vm336_vm1, %v312_v15, %v328_v13 }
  0xba   :  { %v318_v11 = vrot.slane %v317_v7, 1  ;;  %v333_v12 = vadd.f32 %v332_v8, %v331_v6 }
  0xbc   :  { %v334_v14 = vrot.slane %v333_v12, 1  ;;  %v319_v16 = vadd.f32 %v318_v11, %v317_v7 }
  0xbe   :  { %v335_v17 = vadd.f32 %v334_v14, %v333_v12  ;;  %v436_v12 = vstv %s435_s22 }
  0xc0   :  { %v338_v19 = vsel %vm336_vm1, %v319_v16, %v335_v17 }
  0xc1   :  { %v339_v20 = vadd.f32 %v338_v19, %v337_v18 }
  0xc3   :  { %340 = vrot.lane.b32.xlu0 %v339_v20, %s1617_s11 }
 0x135   :  { %v341_v25 = vpop.permute.xlu0 %340 }
 0x136   :  { %v344_v26 = vadd.f32 %v341_v25, %v339_v20 }
 0x138   :  { %v345_v27 = vmul.f32 0.125, %v344_v26 }
 0x13a   :  { %v348_v30 = vmul.f32 %v345_v27, %v345_v27 }
 0x13c   :  { %v350_v31 = vrot.slane %v348_v30, 7 }
 0x13e   :  { %v352_v34 = vsub.f32 %v345_v27, %v350_v31 }
 0x140   :  { %v353_v35 = vadd.f32 1e-05, %v352_v34 }
 0x142   :  { %1582 = vrsqrt.f32 %v353_v35  ;;  %vm360_vm3 = vweird.f32 %v353_v35 }
 0x148   :  { %v1583_v43 = vpop.eup %1582 }
 0x149   :  { %v355_v44 = vmul.f32 %v1583_v43, %v353_v35  ;;  %vm361_vm2 = vweird.f32 %v1583_v43 }
 0x14a   :  { %vm362_vm4 = vmor %vm360_vm3, %vm361_vm2 }
 0x14b   :  { %v356_v47 = vmul.f32 %v1583_v43, %v355_v44  ;;  %v633_v44 = vld [vmem:[%s2273_s4 + $0x30] sm:$0xff] }
 0x14d   :  { %v357_v48 = vmul.f32 0.5, %v356_v47 }
 0x14f   :  { %v358_v49 = vsub.f32 1.5, %v357_v48  ;;  %v630_v48 = vld [vmem:[%s2273_s4 + $0x18] sm:$0xff] }
 0x151   :  { %v359_v50 = vmul.f32 %v1583_v43, %v358_v49  ;;  %v629_v49 = vld [vmem:[%s2273_s4 + $0x10] sm:$0xff] }
 0x153   :  { %v363_v51 = vsel %vm362_vm4, %v1583_v43, %v359_v50  ;;  %v634_v43 = vld [vmem:[%s2273_s4 + $0x38] sm:$0xff] }
 0x154   :  { %365 = vst [vmem:[#allocation1] sm:$0xff] %v363_v51  ;;  %647 = vmatpush.msrb.mxu2 %v634_v43 }
 0x155   :  { %366 = vst [vmem:[#allocation1 + $0x9] sm:$0xff] %v363_v51  ;;  %v628_v51 = vld [vmem:[%s2273_s4 + $0x8] sm:$0xff] }
 0x156   :  { %648 = vmatpush.msrb.mxu2 %v633_v44 }
 0x158   :  { %649 = vmatpush.msrb.mxu2 %v632_v45 }
 0x15a   :  { %650 = vmatpush.msrb.mxu2 %v631_v46 }
 0x15c   :  { %v368_v53 = vld [vmem:[#allocation1 + $0x1] ss:$9 sm:$0xff]  ;;  %651 = vmatpush.msrb.mxu2 %v630_v48 }
 0x15d   :  { %v370_v54 = vmul.f32 %v1316_v52, %v368_v53  ;;  %v588_v52 = vstv %s1382_s13  ;;  %v627_v53 = vld [vmem:[%s2273_s4] sm:$0xff]  ;;  %s1386_s4 = sld [smem:[#allocation2 + $0x3]] }
 0x15e   :  { %652 = vmatpush.msrb.mxu2 %v629_v49 }
 0x15f   :  { %v374_v55 = vperm.slane %v370_v54, 0  ;;  %v375_v57 = vperm.slane %v370_v54, 1 }
 0x160   :  { %653 = vmatpush.msrb.mxu2 %v628_v51 }
 0x161   :  { %v379_v58 = vmul.f32 %v375_v57, %v345_v27  ;;  %v378_v59 = vmul.f32 %v374_v55, %v345_v27  ;;  %v386_v0 = vmul.f32 %v374_v55, %v1871_v42  ;;  %v387_v2 = vmul.f32 %v375_v57, %v1878_v56 }
 0x162   :  { %v606_v57 = vstv %s1383_s18  ;;  %654 = vmatpush.msrb.mxu2 %v627_v53 }
 0x163   :  { %v382_v60 = vrot.slane %v379_v58, 7 }
 0x165   :  { %v383_v62 = vsel %vm336_vm1, %v378_v59, %v382_v60 }
 0x166   :  { %v385_v63 = vsub.f32 %v1317_v61, %v383_v62 }
 0x168   :  { %v389_v1 = vperm.slane %v385_v63, 0  ;;  %v390_v3 = vperm.slane %v385_v63, 1 }
 0x16a   :  { %v393_v4 = vadd.f32 %v389_v1, %v386_v0  ;;  %v394_v5 = vadd.f32 %v390_v3, %v387_v2 }
 0x16c   :  { %vm395_vm5 = vcmp.gt.f32.partialorder %v393_v4, 0.0  ;;  %v397_v6 = vmul.f32 0.01, %v393_v4  ;;  %vm396_vm6 = vcmp.gt.f32.partialorder %v394_v5, 0.0  ;;  %v398_v7 = vmul.f32 0.01, %v394_v5 }
 0x16e   :  { %v399_v8 = vsel %vm395_vm5, %v393_v4, %v397_v6  ;;  %v400_v9 = vsel %vm396_vm6, %v394_v5, %v398_v7 }
 0x16f   :  { %v401_v10 = vpack.c.bf16 %v399_v8, %v399_v8  ;;  %v402_v11 = vpack.c.bf16 %v400_v9, %v400_v9  ;;  %v660_v9 = vstv %s1386_s4 }
 0x171   :  { %541 = vmatmul.bf16.vlgmr.msrb.gmra.mxu0 %v401_v10  ;;  %554 = vmatmul.bf16.vlgmr.msrb.gmra.mxu1 %v402_v11 }
 0x1ee   :  { %v542_v13 = vpop.f32.mrf.mxu0  ;;  %v555_v42 = vpop.f32.mrf.mxu1 }
 0x1ef   :  { %v543_v14 = vadd.f32 %v542_v13, %v436_v12 }
 0x1f1   :  { %v556_v56 = vadd.f32 %v555_v42, %v543_v14 }
 0x1f3   :  { %v560_v15 = vsel %vm559_vm7, %v556_v56, 0.0  ;;  %v571_v16 = vmul.f32 %v556_v56, %v556_v56 }
 0x1f4   :  { %561 = vadd.xlane.f32.xlu0 %v560_v15 }
 0x1f5   :  { %v572_v17 = vsel %vm559_vm7, %v571_v16, 0.0  ;;  %vm681_vm7 = vcmask 1024  }
 0x1f6   :  { %v544_v18 = vpop.f32.mrf.mxu0  ;;  %v557_v19 = vpop.f32.mrf.mxu1  ;;  %573 = vadd.xlane.f32.xlu1 %v572_v17 }
 0x267   :  { %v562_v20 = vpop.xlane.xlu0 %561 }
 0x268   :  { %v563_v21 = vrot.slane %v562_v20, 4 }
 0x269   :  { %v574_v22 = vpop.xlane.xlu1 %573 }
 0x26a   :  { %v564_v23 = vadd.f32 %v563_v21, %v562_v20  ;;  %v575_v24 = vrot.slane %v574_v22, 4 }
 0x26c   :  { %v565_v25 = vrot.slane %v564_v23, 2  ;;  %v576_v26 = vadd.f32 %v575_v24, %v574_v22 }
 0x26e   :  { %v577_v27 = vrot.slane %v576_v26, 2  ;;  %v566_v28 = vadd.f32 %v565_v25, %v564_v23 }
 0x270   :  { %v567_v29 = vrot.slane %v566_v28, 1  ;;  %v578_v30 = vadd.f32 %v577_v27, %v576_v26 }
 0x272   :  { %v568_v31 = vadd.f32 %v567_v29, %v566_v28  ;;  %v579_v32 = vrot.slane %v578_v30, 1 }
 0x274   :  { %1568 = vpush %v568_v31  ;;  %v580_v33 = vadd.f32 %v579_v32, %v578_v30 }
 0x276   :  { %1570 = vpush %v580_v33 }
 0x2a5   :  { %s1569_s23 = spop %1568 }
 0x2a6   :  { %s1945_s24 = smul.f32 0.0078125, %s1569_s23 }
 0x2a7   :  { %s1571_s25 = spop %1570 }
 0x2a8   :  { %s583_s26 = smul.f32 %s1945_s24, %s1945_s24  ;;  %v586_v47 = vstv %s1945_s24 }
 0x2a9   :  { %s582_s27 = smul.f32 0.0078125, %s1571_s25  ;;  %v587_v50 = vsub.f32 %v556_v56, %v586_v47  ;;  %s1388_s25 = sld [smem:[#allocation2 + $0x4]] }
 0x2ab   :  { %s584_s28 = ssub.f32 %s582_s27, %s583_s26  ;;  %v589_v54 = vmul.f32 %v588_v52, %v587_v50  ;;  %s1618_s26 = smov 127  }
 0x2ad   :  { %s590_s29 = sadd.f32 1e-05, %s584_s28 }
 0x2af   :  { %v591_v34 = vstv %s590_s29  ;;  %v694_v10 = vstv %s1388_s25 }
 0x2b0   :  { %1584 = vrsqrt.f32 %v591_v34  ;;  %vm598_vm9 = vweird.f32 %v591_v34 }
 0x2b6   :  { %v1585_v35 = vpop.eup %1584 }
 0x2b7   :  { %v593_v36 = vmul.f32 %v1585_v35, %v591_v34  ;;  %vm599_vm8 = vweird.f32 %v1585_v35 }
 0x2b8   :  { %vm600_vm10 = vmor %vm598_vm9, %vm599_vm8 }
 0x2b9   :  { %v594_v37 = vmul.f32 %v1585_v35, %v593_v36 }
 0x2bb   :  { %v595_v38 = vmul.f32 0.5, %v594_v37 }
 0x2bd   :  { %v596_v39 = vsub.f32 1.5, %v595_v38 }
 0x2bf   :  { %v597_v40 = vmul.f32 %v1585_v35, %v596_v39 }
 0x2c1   :  { %v601_v41 = vsel %vm600_vm10, %v1585_v35, %v597_v40 }
 0x2c2   :  { %1572 = vpush %v601_v41 }
 0x2f3   :  { %s1573_s24 = spop %1572 }
 0x2f4   :  { %v603_v55 = vstv %s1573_s24 }
 0x2f5   :  { %v604_v58 = vmul.f32 %v603_v55, %v589_v54 }
 0x2f7   :  { %v607_v59 = vadd.f32 %v606_v57, %v604_v58  ;;  %v1484_v57 = vld [vmem:[%s2272_s3 + $0xb0] sm:$0xf]  ;;  %v1567_v58 = vld [vmem:[%s2272_s3 + $0xb4] sm:$0xf0] }
 0x2f9   :  { %v1384_v60 = vmul.f32 -1.442695, %v607_v59  ;;  %v1566_v59 = vld [vmem:[%s2272_s3 + $0xb4] sm:$0xf] }
 0x2fb   :  { %1586 = vpow2.f32 %v1384_v60  ;;  %v1485_v60 = vor.u32 %v1567_v58, %v1484_v57 }
 0x2fd   :  { %927 = vmatpush.bf16.msra.mxu2 %v1485_v60  ;;  %v1547_v60 = vld [vmem:[%s2272_s3 + $0x14] sm:$0xf0] }
 0x301   :  { %v1587_v61 = vpop.eup %1586 }
 0x302   :  { %v611_v62 = vadd.f32 1.0, %v1587_v61  ;;  %v1486_v61 = vld [vmem:[%s2272_s3 + $0xb8] sm:$0xf0] }
 0x304   :  { %1588 = vrcp.f32 %v611_v62  ;;  %v623_v2 = vand.u32 2147483648, %v611_v62  ;;  %v621_v4 = vand.u32 2147483647, %v611_v62  ;;  %vm617_vm12 = vweird.f32 %v611_v62 }
 0x306   :  { %v624_v6 = vor.u32 1.1754944e-38, %v623_v2  ;;  %vm622_vm15 = vcmp.eq.f32.partialorder %v621_v4, 8.507059e+37 }
 0x30a   :  { %v1589_v63 = vpop.eup %1588 }
 0x30b   :  { %v613_v0 = vmul.f32 %v1589_v63, %v611_v62  ;;  %vm618_vm11 = vweird.f32 %v1589_v63  ;;  %v1489_v62 = vor.u32 %v1566_v59, %v1486_v61  ;;  %v1404_v59 = vld [vmem:[%s2272_s3 + $0x10] sm:$0xf] }
 0x30c   :  { %vm619_vm13 = vmor %vm617_vm12, %vm618_vm11 }
 0x30d   :  { %v614_v1 = vsub.f32 1.0, %v613_v0  ;;  %953 = vmatpush.bf16.msra.mxu1 %v1489_v62  ;;  %v1565_v0 = vld [vmem:[%s2272_s3 + $0xa4] sm:$0xf0]  ;;  %v1546_v62 = vld [vmem:[%s2272_s3 + $0x14] sm:$0xf] }
 0x30f   :  { %v615_v3 = vmul.f32 %v1589_v63, %v614_v1  ;;  %v1564_v1 = vld [vmem:[%s2272_s3 + $0xa4] sm:$0xf] }
 0x311   :  { %v616_v5 = vadd.f32 %v1589_v63, %v615_v3  ;;  %v1478_v3 = vld [vmem:[%s2272_s3 + $0xa8] sm:$0xf0] }
 0x312   :  { %v1481_v4 = vor.u32 %v1564_v1, %v1478_v3 }
 0x313   :  { %v620_v7 = vsel %vm619_vm13, %v1589_v63, %v616_v5  ;;  %v1476_v63 = vld [vmem:[%s2272_s3 + $0xa0] sm:$0xf]  ;;  %v1468_v5 = vld [vmem:[%s2272_s3 + $0x90] sm:$0xf] }
 0x314   :  { %v1974_v8 = vsel %vm622_vm15, %v624_v6, %v620_v7  ;;  %v1477_v2 = vor.u32 %v1565_v0, %v1476_v63  ;;  %954 = vmatpush.bf16.msra.mxu1 %v1481_v4  ;;  %v1563_v6 = vld [vmem:[%s2272_s3 + $0x94] sm:$0xf0]  ;;  %v1562_v7 = vld [vmem:[%s2272_s3 + $0x94] sm:$0xf]  ;;  %v1406_v63 = vld [vmem:[%s2272_s3 + $0x18] sm:$0xf0] }
 0x315   :  { %1385 = vmatmul.msk.f32.vlgmr.msrb.gmra.mxu2 %vm635_vm14, %v1974_v8  ;;  %vm744_vm13 = vcmp.gt.f32.partialorder %v1974_v8, 1e-07 }
 0x316   :  { %928 = vmatpush.bf16.msra.mxu2 %v1477_v2  ;;  %v1405_v2 = vor.u32 %v1547_v60, %v1404_v59 }
 0x398   :  { %v656_v11 = vpop.f32.mrf.mxu2 }
 0x399   :  { %v661_v12 = vadd.f32 %v660_v9, %v656_v11  ;;  %v695_v13 = vadd.f32 %v694_v10, %v656_v11  ;;  %v1469_v9 = vor.u32 %v1563_v6, %v1468_v5  ;;  %v1470_v10 = vld [vmem:[%s2272_s3 + $0x98] sm:$0xf0]  ;;  %v1409_v5 = vor.u32 %v1546_v62, %v1406_v63 }
 0x39a   :  { %v1473_v11 = vor.u32 %v1562_v7, %v1470_v10 }
 0x39b   :  { %v1387_v42 = vmul.f32 -1.442695, %v661_v12  ;;  %v1389_v14 = vmul.f32 -1.442695, %v695_v13  ;;  %929 = vmatpush.bf16.msra.mxu2 %v1469_v9  ;;  %v1460_v12 = vld [vmem:[%s2272_s3 + $0x80] sm:$0xf] }
 0x39c   :  { %955 = vmatpush.bf16.msra.mxu1 %v1473_v11  ;;  %v1561_v13 = vld [vmem:[%s2272_s3 + $0x84] sm:$0xf0]  ;;  %v1396_v11 = vld [vmem:[%s2272_s3] sm:$0xf] }
 0x39d   :  { %1590 = vpow2.f32 %v1387_v42  ;;  %v1560_v42 = vld [vmem:[%s2272_s3 + $0x84] sm:$0xf] }
 0x39e   :  { %1592 = vpow2.f32 %v1389_v14  ;;  %v1461_v14 = vor.u32 %v1561_v13, %v1460_v12  ;;  %v1545_v12 = vld [vmem:[%s2272_s3 + $0x4] sm:$0xf0]  ;;  %v1544_v13 = vld [vmem:[%s2272_s3 + $0x4] sm:$0xf] }
 0x3a0   :  { %930 = vmatpush.bf16.msra.mxu2 %v1461_v14  ;;  %v1398_v14 = vld [vmem:[%s2272_s3 + $0x8] sm:$0xf0] }
 0x3a3   :  { %v1591_v56 = vpop.eup %1590 }
 0x3a4   :  { %v1593_v15 = vpop.eup %1592  ;;  %v665_v16 = vadd.f32 1.0, %v1591_v56  ;;  %v1462_v56 = vld [vmem:[%s2272_s3 + $0x88] sm:$0xf0] }
 0x3a5   :  { %v699_v17 = vadd.f32 1.0, %v1593_v15  ;;  %v1465_v15 = vor.u32 %v1560_v42, %v1462_v56  ;;  %v1397_v42 = vor.u32 %v1545_v12, %v1396_v11  ;;  %v1401_v56 = vor.u32 %v1544_v13, %v1398_v14 }
 0x3a6   :  { %1594 = vrcp.f32 %v665_v16  ;;  %v677_v24 = vand.u32 2147483648, %v665_v16  ;;  %v675_v27 = vand.u32 2147483647, %v665_v16  ;;  %vm671_vm4 = vweird.f32 %v665_v16 }
 0x3a7   :  { %1596 = vrcp.f32 %v699_v17  ;;  %v711_v25 = vand.u32 2147483648, %v699_v17  ;;  %v709_v29 = vand.u32 2147483647, %v699_v17  ;;  %vm705_vm5 = vweird.f32 %v699_v17  ;;  %956 = vmatpush.bf16.msra.mxu1 %v1465_v15 }
 0x3a8   :  { %v678_v32 = vor.u32 1.1754944e-38, %v677_v24  ;;  %vm676_vm9 = vcmp.eq.f32.partialorder %v675_v27, 8.507059e+37  ;;  %v1556_v24 = vld [vmem:[%s2272_s3 + $0x64] sm:$0xf] }
 0x3a9   :  { %v712_v33 = vor.u32 1.1754944e-38, %v711_v25  ;;  %vm710_vm10 = vcmp.eq.f32.partialorder %v709_v29, 8.507059e+37  ;;  %v1446_v25 = vld [vmem:[%s2272_s3 + $0x68] sm:$0xf0]  ;;  %v1555_v29 = vld [vmem:[%s2272_s3 + $0x54] sm:$0xf0] }
 0x3aa   :  { %v1449_v27 = vor.u32 %v1556_v24, %v1446_v25  ;;  %v1021_v24 = vld [vmem:[%s2274_s5 + $0xd8] sm:$0xff] }
 0x3ac   :  { %v1595_v18 = vpop.eup %1594 }
 0x3ad   :  { %v1597_v19 = vpop.eup %1596  ;;  %v667_v20 = vmul.f32 %v1595_v18, %v665_v16  ;;  %vm672_vm2 = vweird.f32 %v1595_v18  ;;  %v1452_v16 = vld [vmem:[%s2272_s3 + $0x70] sm:$0xf] }
 0x3ae   :  { %v701_v21 = vmul.f32 %v1597_v19, %v699_v17  ;;  %vm706_vm3 = vweird.f32 %v1597_v19  ;;  %vm673_vm6 = vmor %vm671_vm4, %vm672_vm2  ;;  %v1559_v17 = vld [vmem:[%s2272_s3 + $0x74] sm:$0xf0] }
 0x3af   :  { %v668_v22 = vsub.f32 1.0, %v667_v20  ;;  %vm707_vm8 = vmor %vm705_vm5, %vm706_vm3  ;;  %v1454_v20 = vld [vmem:[%s2272_s3 + $0x78] sm:$0xf0] }
 0x3b0   :  { %v702_v23 = vsub.f32 1.0, %v701_v21  ;;  %v1444_v21 = vld [vmem:[%s2272_s3 + $0x60] sm:$0xf] }
 0x3b1   :  { %v669_v26 = vmul.f32 %v1595_v18, %v668_v22  ;;  %v1557_v22 = vld [vmem:[%s2272_s3 + $0x64] sm:$0xf0] }
 0x3b2   :  { %v703_v28 = vmul.f32 %v1597_v19, %v702_v23 }
 0x3b3   :  { %v670_v30 = vadd.f32 %v1595_v18, %v669_v26  ;;  %v1445_v26 = vor.u32 %v1557_v22, %v1444_v21  ;;  %v1009_v21 = vld [vmem:[%s2274_s5 + $0x78] sm:$0xff]  ;;  %v1023_v22 = vld [vmem:[%s2274_s5 + $0xe8] sm:$0xff] }
 0x3b4   :  { %v704_v31 = vadd.f32 %v1597_v19, %v703_v28  ;;  %v1436_v28 = vld [vmem:[%s2272_s3 + $0x50] sm:$0xf]  ;;  %1026 = vmatpush.msrb.mxu2 %v1009_v21 }
 0x3b5   :  { %v674_v34 = vsel %vm673_vm6, %v1595_v18, %v670_v30  ;;  %v1558_v18 = vld [vmem:[%s2272_s3 + $0x74] sm:$0xf] }
 0x3b6   :  { %v708_v35 = vsel %vm707_vm8, %v1597_v19, %v704_v31  ;;  %v679_v36 = vsel %vm676_vm9, %v678_v32, %v674_v34  ;;  %v1453_v19 = vor.u32 %v1559_v17, %v1452_v16  ;;  %v1457_v23 = vor.u32 %v1558_v18, %v1454_v20  ;;  %v1554_v30 = vld [vmem:[%s2272_s3 + $0x54] sm:$0xf]  ;;  %v1438_v31 = vld [vmem:[%s2272_s3 + $0x58] sm:$0xf0]  ;;  %v1428_v34 = vld [vmem:[%s2272_s3 + $0x40] sm:$0xf] }
 0x3b7   :  { %v713_v37 = vsel %vm710_vm10, %v712_v33, %v708_v35  ;;  %v682_v38 = vsel %vm681_vm7, %v679_v36, 0.0  ;;  %v1437_v32 = vor.u32 %v1555_v29, %v1436_v28  ;;  %v1441_v33 = vor.u32 %v1554_v30, %v1438_v31  ;;  %v1553_v35 = vld [vmem:[%s2272_s3 + $0x44] sm:$0xf0]  ;;  %v1552_v36 = vld [vmem:[%s2272_s3 + $0x44] sm:$0xf]  ;;  %v1024_v20 = vld [vmem:[%s2274_s5 + $0xf0] sm:$0xff] }
 0x3b8   :  { %716 = vrot.lane.b32.xlu1 %v713_v37, %s1618_s26  ;;  %683 = vadd.xlane.f32.xlu2 %v682_v38  ;;  %v1430_v37 = vld [vmem:[%s2272_s3 + $0x48] sm:$0xf0]  ;;  %v1020_v30 = vld [vmem:[%s2274_s5 + $0xd0] sm:$0xff]  ;;  %v1006_v31 = vld [vmem:[%s2274_s5 + $0x60] sm:$0xff] }
 0x3b9   :  { %910 = vmatpush.bf16.msrb.mxu3 %v1453_v19  ;;  %936 = vmatpush.bf16.msra.mxu0 %v1457_v23  ;;  %v1025_v19 = vld [vmem:[%s2274_s5 + $0xf8] sm:$0xff]  ;;  %v1022_v23 = vld [vmem:[%s2274_s5 + $0xe0] sm:$0xff]  ;;  %v1007_v29 = vld [vmem:[%s2274_s5 + $0x68] sm:$0xff] }
 0x3bd   :  { %911 = vmatpush.bf16.msrb.mxu3 %v1445_v26  ;;  %937 = vmatpush.bf16.msra.mxu0 %v1449_v27 }
 0x3c1   :  { %912 = vmatpush.bf16.msrb.mxu3 %v1437_v32  ;;  %938 = vmatpush.bf16.msra.mxu0 %v1441_v33  ;;  %v1019_v32 = vld [vmem:[%s2274_s5 + $0xc8] sm:$0xff]  ;;  %v1005_v33 = vld [vmem:[%s2274_s5 + $0x58] sm:$0xff] }
 0x42a   :  { %v717_v39 = vpop.permute.xlu1 %716 }
 0x42b   :  { %v719_v40 = vsel %vm681_vm7, %v717_v39, 0.0  ;;  %v684_v41 = vpop.xlane.xlu2 %683  ;;  %v1429_v39 = vor.u32 %v1553_v35, %v1428_v34  ;;  %v1018_v34 = vld [vmem:[%s2274_s5 + $0xc0] sm:$0xff]  ;;  %v1004_v35 = vld [vmem:[%s2274_s5 + $0x50] sm:$0xff] }
 0x42c   :  { %720 = vadd.xlane.f32.xlu2 %v719_v40  ;;  %v685_v43 = vrot.slane %v684_v41, 4  ;;  %v1433_v40 = vor.u32 %v1552_v36, %v1430_v37  ;;  %v1017_v36 = vld [vmem:[%s2274_s5 + $0xb8] sm:$0xff]  ;;  %v1003_v37 = vld [vmem:[%s2274_s5 + $0x48] sm:$0xff] }
 0x42d   :  { %913 = vmatpush.bf16.msrb.mxu3 %v1429_v39  ;;  %v1002_v39 = vld [vmem:[%s2274_s5 + $0x40] sm:$0xff] }
 0x42e   :  { %v686_v44 = vadd.f32 %v685_v43, %v684_v41  ;;  %v1420_v41 = vld [vmem:[%s2272_s3 + $0x30] sm:$0xf]  ;;  %v1551_v43 = vld [vmem:[%s2272_s3 + $0x34] sm:$0xf0]  ;;  %939 = vmatpush.bf16.msra.mxu0 %v1433_v40  ;;  %v1015_v40 = vld [vmem:[%s2274_s5 + $0xa8] sm:$0xff] }
 0x430   :  { %v687_v45 = vrot.slane %v686_v44, 2 }
 0x432   :  { %v688_v46 = vadd.f32 %v687_v45, %v686_v44  ;;  %v1550_v44 = vld [vmem:[%s2272_s3 + $0x34] sm:$0xf]  ;;  %v1422_v45 = vld [vmem:[%s2272_s3 + $0x38] sm:$0xf0] }
 0x434   :  { %v689_v47 = vrot.slane %v688_v46, 1 }
 0x436   :  { %v690_v48 = vadd.f32 %v689_v47, %v688_v46  ;;  %v1421_v46 = vor.u32 %v1551_v43, %v1420_v41  ;;  %v1425_v47 = vor.u32 %v1550_v44, %v1422_v45  ;;  %v1001_v41 = vld [vmem:[%s2274_s5 + $0x38] sm:$0xff]  ;;  %v1014_v43 = vld [vmem:[%s2274_s5 + $0xa0] sm:$0xff]  ;;  %v1000_v44 = vld [vmem:[%s2274_s5 + $0x30] sm:$0xff] }
 0x437   :  { %v1013_v45 = vld [vmem:[%s2274_s5 + $0x98] sm:$0xff] }
 0x438   :  { %1574 = vpush %v690_v48  ;;  %v1412_v48 = vld [vmem:[%s2272_s3 + $0x20] sm:$0xf]  ;;  %914 = vmatpush.bf16.msrb.mxu3 %v1421_v46  ;;  %940 = vmatpush.bf16.msra.mxu0 %v1425_v47  ;;  %v999_v46 = vld [vmem:[%s2274_s5 + $0x28] sm:$0xff]  ;;  %v1012_v47 = vld [vmem:[%s2274_s5 + $0x90] sm:$0xff] }
 0x469   :  { %s1575_s25 = spop %1574 }
 0x46a   :  { %s692_s13 = smul.f32 0.5, %s1575_s25 }
 0x46c   :  { %v730_v38 = vstv %s692_s13 }
 0x46d   :  { %vm731_vm11 = vcmp.gt.f32.partialorder %v1974_v8, %v730_v38  ;;  %v1016_v38 = vld [vmem:[%s2274_s5 + $0xb0] sm:$0xff] }
 0x49f   :  { %v721_v49 = vpop.xlane.xlu2 %720 }
 0x4a0   :  { %v722_v50 = vrot.slane %v721_v49, 4 }
 0x4a2   :  { %v723_v51 = vadd.f32 %v722_v50, %v721_v49  ;;  %v1549_v49 = vld [vmem:[%s2272_s3 + $0x24] sm:$0xf0]  ;;  %v1619_v50 = vmov 0.0  }
 0x4a3   :  { %v1392_v6 = vsel %vm744_vm13, 1.0, %v1619_v50 }
 0x4a4   :  { %v724_v52 = vrot.slane %v723_v51, 2 }
 0x4a6   :  { %v725_v53 = vadd.f32 %v724_v52, %v723_v51  ;;  %v1390_v51 = vsel %vm731_vm11, 1.0, %v1619_v50  ;;  %v1548_v52 = vld [vmem:[%s2272_s3 + $0x24] sm:$0xf] }
 0x4a7   :  { %v735_v57 = vsub.f32 1.0, %v1390_v51  ;;  %v734_v15 = vmul.f32 %v1390_v51, %v1974_v8  ;;  %v1010_v51 = vld [vmem:[%s2274_s5 + $0x80] sm:$0xff] }
 0x4a8   :  { %v726_v54 = vrot.slane %v725_v53, 1 }
 0x4aa   :  { %v727_v55 = vadd.f32 %v726_v54, %v725_v53  ;;  %v1414_v53 = vld [vmem:[%s2272_s3 + $0x28] sm:$0xf0] }
 0x4ab   :  { %v1417_v58 = vor.u32 %v1548_v52, %v1414_v53  ;;  %v996_v52 = vld [vmem:[%s2274_s5 + $0x10] sm:$0xff]  ;;  %v995_v53 = vld [vmem:[%s2274_s5 + $0x8] sm:$0xff] }
 0x4ac   :  { %1576 = vpush %v727_v55  ;;  %v1413_v55 = vor.u32 %v1549_v49, %v1412_v48  ;;  %v998_v48 = vld [vmem:[%s2274_s5 + $0x20] sm:$0xff]  ;;  %v1011_v49 = vld [vmem:[%s2274_s5 + $0x88] sm:$0xff] }
 0x4ad   :  { %941 = vmatpush.bf16.msra.mxu0 %v1417_v58 }
 0x4ae   :  { %915 = vmatpush.bf16.msrb.mxu3 %v1413_v55  ;;  %v1393_v55 = vld [vmem:[%s2276_s7 + $0x3] ss:$8 sm:$0x3] }
 0x4b1   :  { %942 = vmatpush.bf16.msra.mxu0 %v1409_v5 }
 0x4b2   :  { %916 = vmatpush.bf16.msrb.mxu3 %v1405_v2 }
 0x4b5   :  { %943 = vmatpush.bf16.msra.mxu0 %v1401_v56 }
 0x4b6   :  { %917 = vmatpush.bf16.msrb.mxu3 %v1397_v42 }
 0x4ba   :  { %1046 = vmatpush.msra.mxu3 %v1025_v19 }
 0x4bc   :  { %1047 = vmatpush.msra.mxu3 %v1024_v20 }
 0x4be   :  { %1048 = vmatpush.msra.mxu3 %v1023_v22 }
 0x4c0   :  { %1049 = vmatpush.msra.mxu3 %v1022_v23 }
 0x4c2   :  { %1050 = vmatpush.msra.mxu3 %v1021_v24 }
 0x4c4   :  { %1051 = vmatpush.msra.mxu3 %v1020_v30 }
 0x4c6   :  { %1052 = vmatpush.msra.mxu3 %v1019_v32 }
 0x4c8   :  { %1053 = vmatpush.msra.mxu3 %v1018_v34  ;;  %v1074_v34 = vld [vmem:[%s2275_s6 + $0x8] sm:$0xff] }
 0x4ca   :  { %1054 = vmatpush.msra.mxu3 %v1017_v36 }
 0x4cc   :  { %1055 = vmatpush.msra.mxu3 %v1016_v38 }
 0x4ce   :  { %1056 = vmatpush.msra.mxu3 %v1015_v40 }
 0x4d0   :  { %1057 = vmatpush.msra.mxu3 %v1014_v43 }
 0x4d2   :  { %1058 = vmatpush.msra.mxu3 %v1013_v45 }
 0x4d4   :  { %1059 = vmatpush.msra.mxu3 %v1012_v47 }
 0x4d6   :  { %1060 = vmatpush.msra.mxu3 %v1011_v49 }
 0x4d8   :  { %1061 = vmatpush.msra.mxu3 %v1010_v51 }
 0x4dd   :  { %s1577_s26 = spop %1576 }
 0x4de   :  { %s729_s1 = smul.f32 0.5, %s1577_s26 }
 0x4e0   :  { %v736_v54 = vstv %s729_s1 }
 0x4e1   :  { %vm737_vm12 = vcmp.gt.f32.partialorder %v1974_v8, %v736_v54  ;;  %v994_v54 = vld [vmem:[%s2274_s5] sm:$0xff] }
 0x4e2   :  { %v1391_v61 = vsel %vm737_vm12, 1.0, %v1619_v50  ;;  %v997_v50 = vld [vmem:[%s2274_s5 + $0x18] sm:$0xff] }
 0x4e3   :  { %v740_v0 = vmul.f32 %v1391_v61, %v735_v57  ;;  %v742_v1 = vsub.f32 1.0, %v1391_v61  ;;  %v783_v61 = vperm.slane %v1393_v55, 0 }
 0x4e5   :  { %v743_v3 = vmul.f32 %v742_v1, %v735_v57  ;;  %v741_v4 = vmul.f32 %v740_v0, %v1974_v8  ;;  %v784_v57 = vperm.slane %v1393_v55, 1 }
 0x4e7   :  { %v747_v7 = vmul.f32 %v1392_v6, %v743_v3  ;;  %750 = vrot.lane.b32.xlu2 %v741_v4, %s1617_s11 }
 0x4e9   :  { %v748_v9 = vmul.f32 %v747_v7, %v1974_v8  ;;  %v1008_v8 = vld [vmem:[%s2274_s5 + $0x70] sm:$0xff] }
 0x4ea   :  { %1027 = vmatpush.msrb.mxu2 %v1008_v8 }
 0x4eb   :  { %v755_v10 = vpack.c.bf16 %v748_v9, %v748_v9 }
 0x4ec   :  { %1028 = vmatpush.msrb.mxu2 %v1007_v29 }
 0x4ed   :  { %1490 = vmatmul.msk.bf16.vlgmr.msra.gmra.mxu2 %vm635_vm14, %v755_v10  ;;  %1491 = vmatmul.msk.bf16.vlgmr.msra.gmra.mxu1 %vm635_vm14, %v755_v10 }
 0x4ee   :  { %1029 = vmatpush.msrb.mxu2 %v1006_v31 }
 0x4f0   :  { %1030 = vmatpush.msrb.mxu2 %v1005_v33  ;;  %v1073_v33 = vld [vmem:[%s2275_s6] sm:$0xff] }
 0x4f1   :  { %1094 = vmatpush.msrb.mxu1 %v1073_v33 }
 0x4f2   :  { %1031 = vmatpush.msrb.mxu2 %v1004_v35 }
 0x4f3   :  { %1114 = vmatpush.msra.mxu1 %v1074_v34 }
 0x4f4   :  { %1032 = vmatpush.msrb.mxu2 %v1003_v37 }
 0x4f6   :  { %1033 = vmatpush.msrb.mxu2 %v1002_v39 }
 0x4f8   :  { %1034 = vmatpush.msrb.mxu2 %v1001_v41 }
 0x4fa   :  { %1035 = vmatpush.msrb.mxu2 %v1000_v44 }
 0x4fc   :  { %1036 = vmatpush.msrb.mxu2 %v999_v46 }
 0x4fe   :  { %1037 = vmatpush.msrb.mxu2 %v998_v48 }
 0x500   :  { %1038 = vmatpush.msrb.mxu2 %v997_v50 }
 0x502   :  { %1039 = vmatpush.msrb.mxu2 %v996_v52 }
 0x504   :  { %1040 = vmatpush.msrb.mxu2 %v995_v53 }
 0x506   :  { %1041 = vmatpush.msrb.mxu2 %v994_v54 }
 0x541   :  { %v751_v16 = vpop.permute.xlu2 %750 }
 0x542   :  { %v753_v17 = vsel %vm635_vm14, %v734_v15, %v751_v16  ;;  %vm1075_vm14 = vcmask 64512  }
 0x543   :  { %v754_v18 = vpack.c.bf16 %v753_v17, %v753_v17 }
 0x545   :  { %918 = vmatmul.bf16.vlgmr.msrb.gmra.mxu3 %v754_v18  ;;  %944 = vmatmul.bf16.vlgmr.msra.gmra.mxu0 %v754_v18 }
 0x56a   :  { %v958_v25 = vpop.f32.mrf.mxu1 }
 0x570   :  { %v2153_v26 = vpop.f32.mrf.mxu2 }
 0x572   :  { %v960_v27 = vpop.f32.mrf.mxu1 }
 0x578   :  { %v934_v28 = vpop.f32.mrf.mxu2 }
 0x5c2   :  { %v945_v58 = vpop.f32.mrf.mxu0 }
 0x5c3   :  { %v946_v59 = vadd.f32 %v945_v58, %v784_v57 }
 0x5c5   :  { %v2233_v60 = vadd.f32 %v958_v25, %v946_v59 }
 0x5c7   :  { %v969_v62 = vsel %vm305_vm0, %v2233_v60, 0.0  ;;  %v977_v63 = vmul.f32 %v2233_v60, %v2233_v60 }
 0x5c8   :  { %v970_v0 = vrot.slane %v969_v62, 4  ;;  %v919_v1 = vpop.f32.mrf.mxu3 }
 0x5c9   :  { %v985_v2 = vsel %vm305_vm0, %v977_v63, 0.0  ;;  %v920_v3 = vadd.f32 %v919_v1, %v783_v61  ;;  %v1494_v1 = vld [vmem:[%s2276_s7 + $0x4] ss:$8 sm:$0x3] }
 0x5ca   :  { %v971_v4 = vadd.f32 %v970_v0, %v969_v62  ;;  %v986_v5 = vrot.slane %v985_v2, 4  ;;  %v947_v6 = vpop.f32.mrf.mxu0 }
 0x5cb   :  { %v2241_v7 = vadd.f32 %v2153_v26, %v920_v3  ;;  %v1495_v3 = vld [vmem:[%s2276_s7 + $0x5] ss:$8 sm:$0x3] }
 0x5cc   :  { %v972_v9 = vrot.slane %v971_v4, 2  ;;  %v987_v10 = vadd.f32 %v986_v5, %v985_v2 }
 0x5cd   :  { %v962_v11 = vsel %vm305_vm0, %v2241_v7, 0.0  ;;  %v976_v12 = vmul.f32 %v2241_v7, %v2241_v7 }
 0x5ce   :  { %v963_v13 = vrot.slane %v962_v11, 4  ;;  %v973_v42 = vadd.f32 %v972_v9, %v971_v4  ;;  %v988_v14 = vrot.slane %v987_v10, 2  ;;  %v1165_v9 = vperm.slane %v1495_v3, 0 }
 0x5cf   :  { %v978_v56 = vsel %vm305_vm0, %v976_v12, 0.0 }
 0x5d0   :  { %v964_v15 = vadd.f32 %v963_v13, %v962_v11  ;;  %v979_v16 = vrot.slane %v978_v56, 4  ;;  %v921_v17 = vpop.f32.mrf.mxu3  ;;  %v974_v18 = vrot.slane %v973_v42, 1  ;;  %v989_v19 = vadd.f32 %v988_v14, %v987_v10 }
 0x5d1   :  { %v1166_v13 = vperm.slane %v1495_v3, 1 }
 0x5d2   :  { %v965_v20 = vrot.slane %v964_v15, 2  ;;  %v980_v21 = vadd.f32 %v979_v16, %v978_v56  ;;  %v990_v8 = vrot.slane %v989_v19, 1  ;;  %v975_v22 = vadd.f32 %v974_v18, %v973_v42 }
 0x5d4   :  { %v991_v23 = vadd.f32 %v990_v8, %v989_v19  ;;  %v966_v24 = vadd.f32 %v965_v20, %v964_v15  ;;  %v981_v25 = vrot.slane %v980_v21, 2 }
 0x5d6   :  { %v993_v26 = vsel %vm336_vm1, %v975_v22, %v991_v23  ;;  %v967_v27 = vrot.slane %v966_v24, 1  ;;  %v982_v28 = vadd.f32 %v981_v25, %v980_v21 }
 0x5d7   :  { %1062 = vmatmul.f32.vlgmr.msra.gmra.mxu3 %v993_v26 }
 0x5d8   :  { %v983_v29 = vrot.slane %v982_v28, 1  ;;  %v968_v30 = vadd.f32 %v967_v27, %v966_v24 }
 0x5da   :  { %v984_v31 = vadd.f32 %v983_v29, %v982_v28 }
 0x5dc   :  { %v992_v32 = vsel %vm336_vm1, %v968_v30, %v984_v31 }
 0x5dd   :  { %1042 = vmatmul.f32.vlgmr.msrb.gmra.mxu2 %v992_v32 }
 0x65a   :  { %v1063_v35 = vpop.f32.mrf.mxu3 }
 0x660   :  { %v1043_v36 = vpop.f32.mrf.mxu2 }
 0x661   :  { %v1064_v37 = vadd.f32 %v1063_v35, %v1043_v36 }
 0x663   :  { %v1066_v38 = vmul.f32 0.0078125, %v1064_v37 }
 0x665   :  { %v1067_v39 = vmul.f32 %v1066_v38, %v1066_v38 }
 0x667   :  { %v1069_v40 = vrot.slane %v1067_v39, 7 }
 0x669   :  { %v1071_v41 = vsub.f32 %v1066_v38, %v1069_v40 }
 0x66b   :  { %v1072_v43 = vsel %vm336_vm1, %v1066_v38, %v1071_v41 }
 0x66c   :  { %1492 = vmatmul.msk.f32.vlgmr.msrb.gmra.mxu1 %vm1075_vm14, %v1072_v43 }
 0x674   :  { %1493 = vmatmul.msk.f32.vlgmr.msra.gmra.mxu1 %vm1075_vm14, %v1072_v43 }
 0x6e9   :  { %v1096_v44 = vpop.f32.mrf.mxu1 }
 0x6ea   :  { %v1119_v45 = vadd.f32 1e-05, %v1096_v44  ;;  %v1141_v0 = vperm.slane %v1096_v44, 0 }
 0x6ec   :  { %1598 = vrsqrt.f32 %v1119_v45  ;;  %vm1127_vm2 = vweird.f32 %v1119_v45  ;;  %v1143_v6 = vsub.f32 %v2241_v7, %v1141_v0 }
 0x6f1   :  { %v1116_v46 = vpop.f32.mrf.mxu1 }
 0x6f2   :  { %v1599_v47 = vpop.eup %1598  ;;  %v1120_v48 = vadd.f32 1e-05, %v1116_v46  ;;  %v1142_v2 = vperm.slane %v1116_v46, 0 }
 0x6f3   :  { %v1122_v49 = vmul.f32 %v1599_v47, %v1119_v45  ;;  %vm1128_vm15 = vweird.f32 %v1599_v47 }
 0x6f4   :  { %1600 = vrsqrt.f32 %v1120_v48  ;;  %vm1129_vm3 = vmor %vm1127_vm2, %vm1128_vm15  ;;  %vm1137_vm4 = vweird.f32 %v1120_v48  ;;  %v1144_v10 = vsub.f32 %v2233_v60, %v1142_v2 }
 0x6f5   :  { %v1123_v50 = vmul.f32 %v1599_v47, %v1122_v49 }
 0x6f7   :  { %v1124_v51 = vmul.f32 0.5, %v1123_v50 }
 0x6f9   :  { %v1125_v52 = vsub.f32 1.5, %v1124_v51 }
 0x6fa   :  { %v1601_v53 = vpop.eup %1600 }
 0x6fb   :  { %v1126_v54 = vmul.f32 %v1599_v47, %v1125_v52  ;;  %v1132_v55 = vmul.f32 %v1601_v53, %v1120_v48  ;;  %vm1138_vm1 = vweird.f32 %v1601_v53 }
 0x6fc   :  { %vm1139_vm5 = vmor %vm1137_vm4, %vm1138_vm1 }
 0x6fd   :  { %v1130_v57 = vsel %vm1129_vm3, %v1599_v47, %v1126_v54  ;;  %v1133_v58 = vmul.f32 %v1601_v53, %v1132_v55 }
 0x6fe   :  { %1149 = vst [vmem:[#allocation1] sm:$0xff] %v1130_v57 }
 0x6ff   :  { %v1134_v59 = vmul.f32 0.5, %v1133_v58 }
 0x701   :  { %v1135_v61 = vsub.f32 1.5, %v1134_v59 }
 0x703   :  { %v1136_v62 = vmul.f32 %v1601_v53, %v1135_v61 }
 0x705   :  { %v1140_v63 = vsel %vm1139_vm5, %v1601_v53, %v1136_v62 }
 0x706   :  { %1150 = vst [vmem:[#allocation1 + $0x9] sm:$0xff] %v1140_v63 }
 0x70d   :  { %v1152_v4 = vld [vmem:[#allocation1 + $0x1] ss:$9 sm:$0xff] }
 0x70e   :  { %v1154_v5 = vmul.f32 %v1494_v1, %v1152_v4 }
 0x710   :  { %v1156_v11 = vperm.slane %v1154_v5, 0  ;;  %v1157_v12 = vperm.slane %v1154_v5, 1 }
 0x712   :  { %v1160_v42 = vmul.f32 %v1156_v11, %v1143_v6  ;;  %v1161_v14 = vmul.f32 %v1157_v12, %v1144_v10 }
 0x714   :  { %v1169_v56 = vadd.f32 %v1165_v9, %v1160_v42  ;;  %v1170_v15 = vadd.f32 %v1166_v13, %v1161_v14 }
 0x716   :  { %vm1172_vm6 = vcmp.gt.f32.partialorder %v1170_v15, 0.0  ;;  %v1173_v16 = vmul.f32 0.01, %v1169_v56  ;;  %v1174_v17 = vmul.f32 0.01, %v1170_v15  ;;  %vm1171_vm7 = vcmp.gt.f32.partialorder %v1169_v56, 0.0 }
 0x718   :  { %v1176_v18 = vsel %vm1172_vm6, %v1170_v15, %v1174_v17  ;;  %v1175_v20 = vsel %vm1171_vm7, %v1169_v56, %v1173_v16 }
 0x719   :  { %v1179_v19 = vrot.slane %v1176_v18, 6 }
 0x71b   :  { %v1180_v21 = vsel %vm305_vm0, %v1175_v20, %v1179_v19 }
 0x71c   :  { %1182 = vst [vmem:[%s2278_s9] sm:$0xf] %v1180_v21 }
 0x71d   :  { %1187 = vsyncpa [#allocation3], 1 }

</bundles_post_ra>
